<compile_context>
chip_gen: v5e
topology: v5e:2x2
jax: 0.10.0
libtpu: 0.0.40
codegen_flags: <defaults>
</compile_context>

<pallas_src>
import functools

import jax
import jax.numpy as jnp
from jax import lax
from jax.experimental import pallas as pl
from jax.experimental.pallas import tpu as pltpu

BN_EPS = 1e-5
LEAKY_SLOPE = 0.1


def _round_up(x, m):
    return (x + m - 1) // m * m


def _cdiv(a, b):
    return (a + b - 1) // b


def _pick_tm(m):
    # Large tiles to amortize per-grid-step overhead, but keep >=2 M blocks
    # when possible so the 'parallel' M axis feeds both v7x TensorCores.
    half = _round_up(max(_cdiv(m, 2), 16), 16)
    return min(512, half)


# ----------------------------------------------------------------------------
# Fused head kernel:
#   out = leaky(X @ W1 + b1) @ W2 + b2
# X is im2col patches of the 3x3 conv (BN scale folded into W1); the 1x1 conv
# (W2, b2) runs in the finalize epilogue on the VMEM-resident intermediate.
# ----------------------------------------------------------------------------
def _fused_head_kernel(x_ref, w1_ref, b1_ref, w2_ref, b2_ref, o_ref, acc_ref):
    kk = pl.program_id(1)

    @pl.when(kk == 0)
    def _init():
        acc_ref[...] = jnp.zeros_like(acc_ref)

    # conv1 partial product: (tm, tk) @ (tk, N1) -> f32 VMEM accumulator.
    acc_ref[...] += jnp.dot(x_ref[...], w1_ref[...],
                            preferred_element_type=jnp.float32)

    @pl.when(kk == pl.num_programs(1) - 1)
    def _finalize():
        # conv1 epilogue: folded-BN bias + LeakyReLU(0.1), all in f32.
        h = acc_ref[...] + b1_ref[...]
        h = jnp.where(h > 0, h, LEAKY_SLOPE * h)
        # conv2 (1x1) fused: (tm, N1) @ (N1, N2) on the MXU, bias add, one
        # lane-dense store of the final tile.
        y = jnp.dot(h.astype(jnp.bfloat16), w2_ref[...],
                    preferred_element_type=jnp.float32)
        o_ref[...] = (y + b2_ref[...]).astype(o_ref.dtype)


def fused_head(x, w1, b1, w2, b2):
    """x: (M, K) bf16 patches; w1: (K, N1) bf16; b1: (1, N1) f32;
    w2: (N1, N2) bf16 (N2 already 128-padded); b2: (1, N2) f32.
    Returns (Mp, N2) f32 with Mp = M rounded up to the M tile."""
    m, k = x.shape
    n1 = w1.shape[1]
    n2 = w2.shape[1]

    tm = _pick_tm(m)
    mp = _round_up(m, tm)

    # Full-extent K block at head sizes (no activation padding, single K step);
    # only split + zero-pad K when it would blow up the VMEM working set.
    if k <= 2048:
        tk = k
    else:
        tk = 512
    kp = _round_up(k, tk)

    if (mp, kp) != (m, k):
        x = jnp.pad(x, ((0, mp - m), (0, kp - k)))
    if kp != k:
        w1 = jnp.pad(w1, ((0, kp - k), (0, 0)))

    grid = (mp // tm, kp // tk)

    return pl.pallas_call(
        _fused_head_kernel,
        out_shape=jax.ShapeDtypeStruct((mp, n2), jnp.float32),
        grid_spec=pltpu.PrefetchScalarGridSpec(
            num_scalar_prefetch=0,
            grid=grid,
            in_specs=[
                pl.BlockSpec((tm, tk), lambda i, kk: (i, kk)),   # patches
                pl.BlockSpec((tk, n1), lambda i, kk: (kk, 0)),   # W1 (K-tiled)
                pl.BlockSpec((1, n1), lambda i, kk: (0, 0)),     # b1 (resident)
                pl.BlockSpec((n1, n2), lambda i, kk: (0, 0)),    # W2 (resident)
                pl.BlockSpec((1, n2), lambda i, kk: (0, 0)),     # b2 (resident)
            ],
            out_specs=pl.BlockSpec((tm, n2), lambda i, kk: (i, 0)),
            scratch_shapes=[pltpu.VMEM((tm, n1), jnp.float32)],
        ),
        compiler_params=pltpu.CompilerParams(
            dimension_semantics=("parallel", "arbitrary")),
    )(x, w1, b1, w2, b2)


# ----------------------------------------------------------------------------
# im2col for the 3x3 / stride 1 / pad 1 conv (feature order = (kh, kw, c),
# matching the HWIO weight flattening).
# ----------------------------------------------------------------------------
def _im2col_3x3(x):
    n, h, w, c = x.shape
    xp = jnp.pad(x, ((0, 0), (1, 1), (1, 1), (0, 0)))
    cols = [xp[:, dh:dh + h, dw:dw + w, :] for dh in range(3) for dw in range(3)]
    patches = jnp.concatenate(cols, axis=-1)          # (n, h, w, 9*c)
    return patches.reshape(n * h * w, 9 * c)


# ----------------------------------------------------------------------------
# Deterministic parameter init (CNNBlock semantics, inference-mode BN folded).
# Kernel-side params are pre-cast to bf16 and pre-padded at init time.
# ----------------------------------------------------------------------------
def init_scale_prediction(key, in_channels, num_classes):
    k1a, k1b, k1c, k1d, k1e, k2a, k2b = jax.random.split(key, 7)
    cout1 = 2 * in_channels
    cout2 = 3 * (num_classes + 5)

    # conv1: 3x3, no conv bias, BN(gamma,beta,running stats) + LeakyReLU(0.1).
    fan_in1 = 9 * in_channels
    w1 = jax.random.normal(k1a, (3, 3, in_channels, cout1),
                           jnp.float32) / jnp.sqrt(jnp.float32(fan_in1))
    gamma = 1.0 + 0.1 * jax.random.normal(k1b, (cout1,), jnp.float32)
    beta = 0.1 * jax.random.normal(k1c, (cout1,), jnp.float32)
    r_mean = 0.05 * jax.random.normal(k1d, (cout1,), jnp.float32)
    r_var = 1.0 + 0.1 * jnp.abs(jax.random.normal(k1e, (cout1,), jnp.float32))
    scale = gamma / jnp.sqrt(r_var + BN_EPS)
    w1_folded = (w1 * scale[None, None, None, :]).reshape(fan_in1, cout1)
    b1 = beta - r_mean * scale

    # conv2: 1x1, conv bias, no BN / activation.
    w2 = jax.random.normal(k2a, (cout1, cout2),
                           jnp.float32) / jnp.sqrt(jnp.float32(cout1))
    b2 = 0.1 * jax.random.normal(k2b, (cout2,), jnp.float32)

    n2p = _round_up(cout2, 128)
    return {
        'num_classes': num_classes,
        # f32 originals (used by the pure-JAX reference).
        'w1': w1_folded, 'b1': b1, 'w2': w2, 'b2': b2,
        # Pre-cast / pre-padded kernel-side parameters.
        'w1_bf16': w1_folded.astype(jnp.bfloat16),
        'b1_row': b1.reshape(1, -1).astype(jnp.float32),
        'w2_bf16': jnp.pad(w2, ((0, 0), (0, n2p - cout2))).astype(jnp.bfloat16),
        'b2_row': jnp.pad(b2, (0, n2p - cout2)).reshape(1, -1).astype(
            jnp.float32),
    }


# ----------------------------------------------------------------------------
# Forward pass (mirrors ScalePrediction.forward)
# ----------------------------------------------------------------------------
def scale_prediction_forward(params, x_nchw):
    ncls = params['num_classes']
    n2 = 3 * (ncls + 5)
    x = jnp.transpose(x_nchw, (0, 2, 3, 1))                 # NCHW -> NHWC
    n, h, w, _ = x.shape
    patches = _im2col_3x3(x.astype(jnp.bfloat16))           # (N*H*W, 9*Cin)
    y = fused_head(patches, params['w1_bf16'], params['b1_row'],
                   params['w2_bf16'], params['b2_row'])      # (Mp, N2p) f32
    m = n * h * w
    y = y[:m, :n2]   # single slice at the very end, fused with reshape below
    # NCHW .reshape(N, 3, ncls+5, H, W).permute(0, 1, 3, 4, 2), from NHWC:
    return y.reshape(n, h, w, 3, ncls + 5).transpose(0, 3, 1, 2, 4)


# ----------------------------------------------------------------------------
# Pure-JAX f32 reference (independent of the Pallas / im2col path)
# ----------------------------------------------------------------------------
def _reference_forward(params, x_nchw):
    ncls = params['num_classes']
    x = jnp.transpose(x_nchw, (0, 2, 3, 1)).astype(jnp.float32)
    cin = x.shape[-1]
    w1 = params['w1'].reshape(3, 3, cin, -1)                 # HWIO, BN folded
    y = lax.conv_general_dilated(x, w1, (1, 1), ((1, 1), (1, 1)),
                                 dimension_numbers=('NHWC', 'HWIO', 'NHWC'))
    y = y + params['b1']
    y = jnp.where(y > 0, y, LEAKY_SLOPE * y)
    y = jnp.einsum('nhwc,cd->nhwd', y, params['w2']) + params['b2']
    n, hh, ww, _ = y.shape
    return y.reshape(n, hh, ww, 3, ncls + 5).transpose(0, 3, 1, 2, 4)


# ----------------------------------------------------------------------------
if __name__ == "__main__":
    key = jax.random.PRNGKey(0)
    k_param, k_input = jax.random.split(key)

    num_classes = 80
    in_channels = 32
    batch, hw = 2, 16

    params = init_scale_prediction(k_param, in_channels, num_classes)
    x = jax.random.normal(k_input, (batch, in_channels, hw, hw), jnp.float32)

    # JIT the whole forward: the NCHW->NHWC transpose, bf16 im2col, the single
    # fused pallas_call and the final slice/reshape/permute compile together.
    fwd = jax.jit(functools.partial(scale_prediction_forward, params))

    out = jax.block_until_ready(fwd(x))

    expected_shape = (batch, 3, hw, hw, num_classes + 5)
    assert tuple(out.shape) == expected_shape, tuple(out.shape)
    assert bool(jnp.all(jnp.isfinite(out)))

    # Correctness vs. pure-JAX f32 reference (bf16 MXU tolerance).
    ref = _reference_forward(params, x)
    max_err = float(jnp.max(jnp.abs(out - ref)))
    assert max_err < 0.1, max_err

    print("KERNEL_OK")
</pallas_src>

<mosaic_0001>
module attributes {stable_mosaic.version = 11 : i64} {
  func.func @_fused_head_kernel(%arg0: i32, %arg1: i32, %arg2: memref<256x288xbf16, #tpu.memory_space<vmem>>, %arg3: memref<288x64xbf16, #tpu.memory_space<vmem>>, %arg4: memref<1x64xf32, #tpu.memory_space<vmem>>, %arg5: memref<64x256xbf16, #tpu.memory_space<vmem>>, %arg6: memref<1x256xf32, #tpu.memory_space<vmem>>, %arg7: memref<256x256xf32, #tpu.memory_space<vmem>>, %arg8: memref<256x64xf32, #tpu.memory_space<vmem>>) attributes {dimension_semantics = [#tpu.dimension_semantics<parallel>, #tpu.dimension_semantics<arbitrary>], iteration_bounds = array<i64: 2, 1>, scalar_prefetch = 0 : i64, scratch_operands = 1 : i64, tpu.core_type = #tpu.core_type<tc>, window_params = [{transform_indices = @transform_0, window_bounds = array<i64: 256, 288>}, {transform_indices = @transform_1, window_bounds = array<i64: 288, 64>}, {pipeline_mode = #tpu.pipeline_mode<synchronous>, transform_indices = @transform_2, window_bounds = array<i64: 1, 64>}, {pipeline_mode = #tpu.pipeline_mode<synchronous>, transform_indices = @transform_3, window_bounds = array<i64: 64, 256>}, {pipeline_mode = #tpu.pipeline_mode<synchronous>, transform_indices = @transform_4, window_bounds = array<i64: 1, 256>}, {transform_indices = @transform_5, window_bounds = array<i64: 256, 256>}]} {
    %c0_i32 = arith.constant 0 : i32
    %0 = arith.cmpi eq, %arg1, %c0_i32 : i32
    %1 = arith.extui %0 : i1 to i32
    %c0_i32_0 = arith.constant 0 : i32
    %2 = arith.cmpi ne, %1, %c0_i32_0 : i32
    scf.if %2 {
      %cst_10 = arith.constant 0.000000e+00 : f32
      %12 = vector.broadcast %cst_10 : f32 to vector<256x64xf32>
      %c0_11 = arith.constant 0 : index
      %c0_12 = arith.constant 0 : index
      %13 = vector.load %arg8[%c0_11, %c0_12] : memref<256x64xf32, #tpu.memory_space<vmem>>, vector<256x64xf32>
      tpu.vector_store %arg8[%c0_11, %c0_12], %12 {strides = array<i32>} : memref<256x64xf32, #tpu.memory_space<vmem>>, vector<256x64xf32>,
    } else {
    }
    %c0 = arith.constant 0 : index
    %c0_1 = arith.constant 0 : index
    %3 = vector.load %arg8[%c0, %c0_1] : memref<256x64xf32, #tpu.memory_space<vmem>>, vector<256x64xf32>
    %c0_2 = arith.constant 0 : index
    %c0_3 = arith.constant 0 : index
    %4 = vector.load %arg2[%c0_2, %c0_3] : memref<256x288xbf16, #tpu.memory_space<vmem>>, vector<256x288xbf16>
    %c0_4 = arith.constant 0 : index
    %c0_5 = arith.constant 0 : index
    %5 = vector.load %arg3[%c0_4, %c0_5] : memref<288x64xbf16, #tpu.memory_space<vmem>>, vector<288x64xbf16>
    %cst = arith.constant dense<0.000000e+00> : vector<256x64xf32>
    %6 = tpu.matmul %4, %5, %cst {dimension_numbers = #tpu.dot_dimension_numbers<[1], [0], [0], [1], [0, 0, 1, 1], [], []>} : vector<256x288xbf16>, vector<288x64xbf16>, vector<256x64xf32> -> vector<256x64xf32>
    %7 = arith.addf %3, %6 : vector<256x64xf32>
    %c0_6 = arith.constant 0 : index
    %c0_7 = arith.constant 0 : index
    %8 = vector.load %arg8[%c0_6, %c0_7] : memref<256x64xf32, #tpu.memory_space<vmem>>, vector<256x64xf32>
    tpu.vector_store %arg8[%c0_6, %c0_7], %7 {strides = array<i32>} : memref<256x64xf32, #tpu.memory_space<vmem>>, vector<256x64xf32>,
    %c0_i32_8 = arith.constant 0 : i32
    %9 = arith.cmpi eq, %arg1, %c0_i32_8 : i32
    %10 = arith.extui %9 : i1 to i32
    %c0_i32_9 = arith.constant 0 : i32
    %11 = arith.cmpi ne, %10, %c0_i32_9 : i32
    scf.if %11 {
      %c0_10 = arith.constant 0 : index
      %c0_11 = arith.constant 0 : index
      %12 = vector.load %arg8[%c0_10, %c0_11] : memref<256x64xf32, #tpu.memory_space<vmem>>, vector<256x64xf32>
      %c0_12 = arith.constant 0 : index
      %c0_13 = arith.constant 0 : index
      %13 = vector.load %arg4[%c0_12, %c0_13] : memref<1x64xf32, #tpu.memory_space<vmem>>, vector<1x64xf32>
      %14 = vector.broadcast %13 : vector<1x64xf32> to vector<256x64xf32>
      %15 = arith.addf %12, %14 : vector<256x64xf32>
      %cst_14 = arith.constant 0.000000e+00 : f32
      %16 = vector.broadcast %cst_14 : f32 to vector<256x64xf32>
      %17 = arith.cmpf ogt, %15, %16 : vector<256x64xf32>
      %cst_15 = arith.constant 1.000000e-01 : f32
      %18 = vector.broadcast %cst_15 : f32 to vector<256x64xf32>
      %19 = arith.mulf %18, %15 : vector<256x64xf32>
      %20 = arith.select %17, %15, %19 : vector<256x64xi1>, vector<256x64xf32>
      %21 = arith.truncf %20 : vector<256x64xf32> to vector<256x64xbf16>
      %c0_16 = arith.constant 0 : index
      %c0_17 = arith.constant 0 : index
      %22 = vector.load %arg5[%c0_16, %c0_17] : memref<64x256xbf16, #tpu.memory_space<vmem>>, vector<64x256xbf16>
      %cst_18 = arith.constant dense<0.000000e+00> : vector<256x256xf32>
      %23 = tpu.matmul %21, %22, %cst_18 {dimension_numbers = #tpu.dot_dimension_numbers<[1], [0], [0], [1], [0, 0, 1, 1], [], []>} : vector<256x64xbf16>, vector<64x256xbf16>, vector<256x256xf32> -> vector<256x256xf32>
      %c0_19 = arith.constant 0 : index
      %c0_20 = arith.constant 0 : index
      %24 = vector.load %arg6[%c0_19, %c0_20] : memref<1x256xf32, #tpu.memory_space<vmem>>, vector<1x256xf32>
      %25 = vector.broadcast %24 : vector<1x256xf32> to vector<256x256xf32>
      %26 = arith.addf %23, %25 : vector<256x256xf32>
      %c0_21 = arith.constant 0 : index
      %c0_22 = arith.constant 0 : index
      %27 = vector.load %arg7[%c0_21, %c0_22] : memref<256x256xf32, #tpu.memory_space<vmem>>, vector<256x256xf32>
      tpu.vector_store %arg7[%c0_21, %c0_22], %26 {strides = array<i32>} : memref<256x256xf32, #tpu.memory_space<vmem>>, vector<256x256xf32>,
    } else {
    }
    return
  }
  func.func @transform_0(%arg0: i32, %arg1: i32) -> (i32, i32) {
    %c0_i32 = arith.constant 0 : i32
    return %arg0, %arg1 : i32, i32
  }
  func.func @transform_1(%arg0: i32, %arg1: i32) -> (i32, i32) {
    %c0_i32 = arith.constant 0 : i32
    %c0_i32_0 = arith.constant 0 : i32
    return %arg1, %c0_i32 : i32, i32
  }
  func.func @transform_2(%arg0: i32, %arg1: i32) -> (i32, i32) {
    %c0_i32 = arith.constant 0 : i32
    %c0_i32_0 = arith.constant 0 : i32
    %c0_i32_1 = arith.constant 0 : i32
    return %c0_i32, %c0_i32_0 : i32, i32
  }
  func.func @transform_3(%arg0: i32, %arg1: i32) -> (i32, i32) {
    %c0_i32 = arith.constant 0 : i32
    %c0_i32_0 = arith.constant 0 : i32
    %c0_i32_1 = arith.constant 0 : i32
    return %c0_i32, %c0_i32_0 : i32, i32
  }
  func.func @transform_4(%arg0: i32, %arg1: i32) -> (i32, i32) {
    %c0_i32 = arith.constant 0 : i32
    %c0_i32_0 = arith.constant 0 : i32
    %c0_i32_1 = arith.constant 0 : i32
    return %c0_i32, %c0_i32_0 : i32, i32
  }
  func.func @transform_5(%arg0: i32, %arg1: i32) -> (i32, i32) {
    %c0_i32 = arith.constant 0 : i32
    %c0_i32_0 = arith.constant 0 : i32
    return %arg0, %c0_i32 : i32, i32
  }
}

</mosaic_0001>

<bundles_post_ra>
// kernel: scale_prediction_forward.1
= control target key start
LH: loop header
LB: loop body
LE: loop exit
PB: predicated region body
PF: predicated region fallthrough
CT: control target
= control target key end

     0   :  { %s2323_s18 = smov 0   ;;  %s2325_s19 = smov 0   ;;  %s2932_s0 = inlined_call_operand.vmem [shape: bf16[512,288], index: 0, kind: input, shape index: {}]   ;;  %s2933_s1 = inlined_call_operand.vmem [shape: bf16[288,64], index: 1, kind: input, shape index: {}]   ;;  %s2934_s2 = inlined_call_operand.vmem [shape: f32[1,64], index: 2, kind: input, shape index: {}]   ;;  %s2935_s3 = inlined_call_operand.vmem [shape: bf16[64,256], index: 3, kind: input, shape index: {}]   ;;  %s2936_s4 = inlined_call_operand.vmem [shape: f32[1,256], index: 4, kind: input, shape index: {}]   ;;  %s2937_s5 = inlined_call_operand.vmem [shape: f32[512,256], index: 5, kind: output, shape index: {}]  }
   0x1   :  { %s2327_s20 = smov 0  }
   0x2 LB: > { %s27_s21 = sadd.s32 1, %s2286_s19  ;;  %p1802_p0 = scmp.ge.s32.totalorder %s2290_s20, 1  ;;  %s2290_s20 = sphi %s2327_s20, %s15_s20   ;;  %s2286_s19 = sphi %s2325_s19, %s2939_s19   ;;  %s2282_s18 = sphi %s2323_s18, %s2938_s18  }
   0x3   : > { %p29_p1 = scmp.ge.s32.totalorder %s27_s21, 2  ;;  %p219_p2 = scmp.lt.s32.totalorder %s2290_s20, 3 }
   0x5   : > { %s2941_s21 = smov (%p29_p1, %s27_s21), 0  ;;  %p220_p3 = pnand %p1802_p0, %p219_p2 }
   0x6   : > { %s1803_s30 = sshll.u32 (!%p220_p3), %s2282_s18, 5 }
   0x7   : > { %223 = sbr.rel (%p220_p3) target bundleno = 805 (0x325), region = 40  ;;  %p260_p4 = scmp.lt.s32.totalorder (!%p220_p3), %s1803_s30, 63 }
   0xc   : > { %v2210_v0 = vld [vmem:[%s2933_s1 + $0x38] sm:$0xff]  ;;  %v2209_v1 = vld [vmem:[%s2933_s1 + $0x30] sm:$0xff]  ;;  %v2220_v2 = vld [vmem:[%s2933_s1 + $0x88] sm:$0xff]  ;;  %s2943_s30 = smov (!%p260_p4, %s1803_s30), 63  ;;  %vm801_vm0 = vcmask 261120   ;;  %vm288_vm1 = vcmask 523264  }
   0xd   : > { %850 = vmatpush.bf16.msra.mxu0 %v2210_v0  ;;  %2229 = vmatpush.bf16.msra.mxu1 %v2210_v0  ;;  %v2208_v3 = vld [vmem:[%s2933_s1 + $0x28] sm:$0xff]  ;;  %v2207_v4 = vld [vmem:[%s2933_s1 + $0x20] sm:$0xff]  ;;  %v2206_v5 = vld [vmem:[%s2933_s1 + $0x18] sm:$0xff]  ;;  %s2241_s12 = smul.u32 12, %s2943_s30 }
   0xe   : > { %2237 = vmatpush.bf16.msra.mxu2 %v2220_v2  ;;  %2238 = vmatpush.bf16.msra.mxu3 %v2220_v2  ;;  %v2205_v6 = vld [vmem:[%s2933_s1 + $0x10] sm:$0xff]  ;;  %v2204_v7 = vld [vmem:[%s2933_s1 + $0x8] sm:$0xff]  ;;  %v2203_v8 = vld [vmem:[%s2933_s1] sm:$0xff] }
   0xf   : > { %s2371_s17 = scalar_lea.vmem %s2932_s0, %s2241_s12  ;;  %v2218_v13 = vld [vmem:[%s2933_s1 + $0x78] sm:$0xff]  ;;  %v2217_v16 = vld [vmem:[%s2933_s1 + $0x70] sm:$0xff]  ;;  %v2216_v17 = vld [vmem:[%s2933_s1 + $0x68] sm:$0xff]  ;;  %s2154_s12 = sshll.u32 %s2943_s30, 4 }
  0x10   : > { %v1810_v9 = vld [vmem:[%s2371_s17] sm:$0xf]  ;;  %v2156_v10 = vld [vmem:[%s2371_s17 + $0x8] sm:$0xf0]  ;;  %v1978_v11 = vld [vmem:[%s2371_s17 + $0x150] sm:$0xf] }
  0x11   : > { %851 = vmatpush.bf16.msra.mxu0 %v2209_v1  ;;  %2230 = vmatpush.bf16.msra.mxu1 %v2209_v1  ;;  %v2198_v12 = vld [vmem:[%s2371_s17 + $0x158] sm:$0xf0]  ;;  %v1811_v14 = vor.u32 %v2156_v10, %v1810_v9  ;;  %v2215_v18 = vld [vmem:[%s2933_s1 + $0x60] sm:$0xff]  ;;  %v1822_v19 = vld [vmem:[%s2371_s17 + $0x18] sm:$0xf] }
  0x12   : > { %v1979_v15 = vor.u32 %v2198_v12, %v1978_v11  ;;  %v2159_v20 = vld [vmem:[%s2371_s17 + $0x20] sm:$0xf0]  ;;  %v1990_v21 = vld [vmem:[%s2371_s17 + $0x168] sm:$0xf]  ;;  %v2201_v22 = vld [vmem:[%s2371_s17 + $0x170] sm:$0xf0] }
  0x13   : > { %v2214_v23 = vld [vmem:[%s2933_s1 + $0x58] sm:$0xff]  ;;  %v1823_v24 = vor.u32 %v2159_v20, %v1822_v19  ;;  %v1991_v25 = vor.u32 %v2201_v22, %v1990_v21  ;;  %v2213_v26 = vld [vmem:[%s2933_s1 + $0x50] sm:$0xff]  ;;  %v2212_v27 = vld [vmem:[%s2933_s1 + $0x48] sm:$0xff] }
  0x14   : > { %v2211_v28 = vld [vmem:[%s2933_s1 + $0x40] sm:$0xff]  ;;  %v1834_v29 = vld [vmem:[%s2371_s17 + $0x30] sm:$0xf]  ;;  %v2162_v30 = vld [vmem:[%s2371_s17 + $0x38] sm:$0xf0] }
  0x15   : > { %852 = vmatpush.bf16.msra.mxu0 %v2208_v3  ;;  %2231 = vmatpush.bf16.msra.mxu1 %v2208_v3  ;;  %v2155_v31 = vld [vmem:[%s2371_s17 + $0x4] sm:$0xf]  ;;  %v1812_v32 = vld [vmem:[%s2371_s17 + $0xc] sm:$0xf0]  ;;  %v1835_v33 = vor.u32 %v2162_v30, %v1834_v29  ;;  %v1846_v35 = vld [vmem:[%s2371_s17 + $0x48] sm:$0xf] }
  0x16   : > { %v1815_v34 = vor.u32 %v2155_v31, %v1812_v32  ;;  %v2165_v36 = vld [vmem:[%s2371_s17 + $0x50] sm:$0xf0]  ;;  %v2158_v37 = vld [vmem:[%s2371_s17 + $0x1c] sm:$0xf]  ;;  %v1824_v38 = vld [vmem:[%s2371_s17 + $0x24] sm:$0xf0] }
  0x17   : > { %v1847_v39 = vor.u32 %v2165_v36, %v1846_v35  ;;  %v1827_v40 = vor.u32 %v2158_v37, %v1824_v38  ;;  %v1858_v41 = vld [vmem:[%s2371_s17 + $0x60] sm:$0xf]  ;;  %v2168_v42 = vld [vmem:[%s2371_s17 + $0x68] sm:$0xf0]  ;;  %v2161_v43 = vld [vmem:[%s2371_s17 + $0x34] sm:$0xf] }
  0x18   : > { %v1836_v44 = vld [vmem:[%s2371_s17 + $0x3c] sm:$0xf0]  ;;  %v1859_v45 = vor.u32 %v2168_v42, %v1858_v41  ;;  %v1870_v47 = vld [vmem:[%s2371_s17 + $0x78] sm:$0xf]  ;;  %v2171_v48 = vld [vmem:[%s2371_s17 + $0x80] sm:$0xf0] }
  0x19   : > { %853 = vmatpush.bf16.msra.mxu0 %v2207_v4  ;;  %2232 = vmatpush.bf16.msra.mxu1 %v2207_v4  ;;  %v1839_v46 = vor.u32 %v2161_v43, %v1836_v44  ;;  %v2164_v49 = vld [vmem:[%s2371_s17 + $0x4c] sm:$0xf]  ;;  %v1848_v50 = vld [vmem:[%s2371_s17 + $0x54] sm:$0xf0]  ;;  %v1871_v51 = vor.u32 %v2171_v48, %v1870_v47  ;;  %v2219_v53 = vld [vmem:[%s2933_s1 + $0x80] sm:$0xff] }
  0x1a   : > { %v1851_v52 = vor.u32 %v2164_v49, %v1848_v50  ;;  %v1890_v54 = vld [vmem:[%s2371_s17 + $0x98] sm:$0xf]  ;;  %v2175_v55 = vld [vmem:[%s2371_s17 + $0xa0] sm:$0xf0]  ;;  %2239 = vmatpush.bf16.msra.mxu2 %v2219_v53  ;;  %2240 = vmatpush.bf16.msra.mxu3 %v2219_v53  ;;  %v1882_v57 = vld [vmem:[%s2371_s17 + $0x90] sm:$0xf] }
  0x1b   : > { %v1891_v56 = vor.u32 %v2175_v55, %v1890_v54  ;;  %v2174_v58 = vld [vmem:[%s2371_s17 + $0x98] sm:$0xf0]  ;;  %v2167_v59 = vld [vmem:[%s2371_s17 + $0x64] sm:$0xf]  ;;  %v1860_v60 = vld [vmem:[%s2371_s17 + $0x6c] sm:$0xf0] }
  0x1c   : > { %v1883_v61 = vor.u32 %v2174_v58, %v1882_v57  ;;  %v1863_v62 = vor.u32 %v2167_v59, %v1860_v60  ;;  %v1902_v63 = vld [vmem:[%s2371_s17 + $0xb0] sm:$0xf]  ;;  %v2178_v0 = vld [vmem:[%s2371_s17 + $0xb8] sm:$0xf0]  ;;  %v2177_v3 = vld [vmem:[%s2371_s17 + $0xb0] sm:$0xf0] }
  0x1d   : > { %854 = vmatpush.bf16.msra.mxu0 %v2206_v5  ;;  %2233 = vmatpush.bf16.msra.mxu1 %v2206_v5  ;;  %v1903_v1 = vor.u32 %v2178_v0, %v1902_v63  ;;  %v2170_v4 = vld [vmem:[%s2371_s17 + $0x7c] sm:$0xf]  ;;  %v1872_v5 = vld [vmem:[%s2371_s17 + $0x84] sm:$0xf0]  ;;  %v2181_v9 = vld [vmem:[%s2371_s17 + $0xd0] sm:$0xf0] }
  0x1e   : > { %2078 = vmatmul.msk.bf16.vlgmr.msra.gmra.mxu2 %vm801_vm0, %v1891_v56  ;;  %v1906_v11 = vld [vmem:[%s2371_s17 + $0xc0] sm:$0xf]  ;;  %v2180_v12 = vld [vmem:[%s2371_s17 + $0xc8] sm:$0xf0]  ;;  %v2187_v35 = vld [vmem:[%s2371_s17 + $0x100] sm:$0xf0] }
  0x1f   : > { %v1926_v21 = vld [vmem:[%s2371_s17 + $0xe0] sm:$0xf]  ;;  %v2184_v22 = vld [vmem:[%s2371_s17 + $0xe8] sm:$0xf0]  ;;  %v1930_v37 = vld [vmem:[%s2371_s17 + $0xf0] sm:$0xf] }
  0x20   : > { %v2186_v38 = vld [vmem:[%s2371_s17 + $0xf8] sm:$0xf0]  ;;  %v1950_v49 = vld [vmem:[%s2371_s17 + $0x110] sm:$0xf]  ;;  %v1920_v55 = vld [vmem:[%s2371_s17 + $0xe4] sm:$0xf0] }
  0x21   : > { %855 = vmatpush.bf16.msra.mxu0 %v2205_v6  ;;  %2234 = vmatpush.bf16.msra.mxu1 %v2205_v6  ;;  %v1931_v41 = vor.u32 %v2186_v38, %v1930_v37  ;;  %v2190_v50 = vld [vmem:[%s2371_s17 + $0x118] sm:$0xf0]  ;;  %v1962_v0 = vld [vmem:[%s2371_s17 + $0x128] sm:$0xf]  ;;  %v2191_v37 = vld [vmem:[%s2371_s17 + $0x124] sm:$0xf] }
  0x22   : > { %v2182_v54 = vld [vmem:[%s2371_s17 + $0xdc] sm:$0xf]  ;;  %v1956_v38 = vld [vmem:[%s2371_s17 + $0x12c] sm:$0xf0] }
  0x23   : > { %v1923_v57 = vor.u32 %v2182_v54, %v1920_v55  ;;  %v1830_v54 = vld [vmem:[%s2371_s17 + $0x20] sm:$0xf]  ;;  %v2160_v55 = vld [vmem:[%s2371_s17 + $0x28] sm:$0xf0] }
  0x25   : > { %856 = vmatpush.bf16.msra.mxu0 %v2204_v7  ;;  %2235 = vmatpush.bf16.msra.mxu1 %v2204_v7  ;;  %v1875_v7 = vor.u32 %v2170_v4, %v1872_v5  ;;  %v2192_v4 = vld [vmem:[%s2371_s17 + $0x128] sm:$0xf0]  ;;  %v2185_v5 = vld [vmem:[%s2371_s17 + $0xf4] sm:$0xf] }
  0x29   : > { %857 = vmatpush.bf16.msra.mxu0 %v2203_v8  ;;  %2236 = vmatpush.bf16.msra.mxu1 %v2203_v8  ;;  %v1914_v8 = vld [vmem:[%s2371_s17 + $0xc8] sm:$0xf] }
  0x2a   : > { %v1915_v10 = vor.u32 %v2181_v9, %v1914_v8 }
  0x2c   : > { %858 = vmatmul.bf16.vlgmr.msra.gmra.mxu0 %v1811_v14  ;;  %928 = vmatmul.bf16.vlgmr.msra.gmra.mxu1 %v1979_v15  ;;  %v1884_v14 = vld [vmem:[%s2371_s17 + $0x9c] sm:$0xf0]  ;;  %v1907_v15 = vor.u32 %v2180_v12, %v1906_v11 }
  0x2d   : > { %1034 = vmatpush.bf16.msrb.mxu0 %v2220_v2  ;;  %939 = vmatpush.bf16.msrb.mxu1 %v2218_v13  ;;  %v1894_v2 = vld [vmem:[%s2371_s17 + $0xa8] sm:$0xf]  ;;  %v2173_v13 = vld [vmem:[%s2371_s17 + $0x94] sm:$0xf] }
  0x2e   : > { %2079 = vmatmul.msk.bf16.gmra.mxu2 %vm801_vm0, %v1903_v1  ;;  %v1895_v6 = vor.u32 %v2177_v3, %v1894_v2  ;;  %v2193_v1 = vld [vmem:[%s2371_s17 + $0x130] sm:$0xf0]  ;;  %v1954_v3 = vld [vmem:[%s2371_s17 + $0x120] sm:$0xf] }
  0x2f   : > { %v1963_v2 = vor.u32 %v2193_v1, %v1962_v0 }
  0x31   : > { %940 = vmatpush.bf16.msrb.mxu1 %v2217_v16  ;;  %1035 = vmatpush.bf16.msrb.mxu0 %v2219_v53  ;;  %v1887_v16 = vor.u32 %v2173_v13, %v1884_v14  ;;  %v2189_v53 = vld [vmem:[%s2371_s17 + $0x110] sm:$0xf0] }
  0x35   : > { %941 = vmatpush.bf16.msrb.mxu1 %v2216_v17 }
  0x39   : > { %942 = vmatpush.bf16.msrb.mxu1 %v2215_v18 }
  0x3c   : > { %863 = vmatmul.bf16.gmra.mxu0 %v1823_v24  ;;  %933 = vmatmul.bf16.gmra.mxu1 %v1991_v25  ;;  %v1918_v24 = vld [vmem:[%s2371_s17 + $0xd8] sm:$0xf]  ;;  %v2183_v25 = vld [vmem:[%s2371_s17 + $0xe0] sm:$0xf0] }
  0x3d   : > { %943 = vmatpush.bf16.msrb.mxu1 %v2214_v23  ;;  %v1927_v23 = vor.u32 %v2184_v22, %v1926_v21  ;;  %v2195_v21 = vld [vmem:[%s2371_s17 + $0x140] sm:$0xf0]  ;;  %v2188_v22 = vld [vmem:[%s2371_s17 + $0x10c] sm:$0xf] }
  0x3e   : > { %2080 = vmatmul.msk.bf16.gmra.mxu2 %vm801_vm0, %v1915_v10 }
  0x41   : > { %944 = vmatpush.bf16.msrb.mxu1 %v2213_v26  ;;  %v2176_v26 = vld [vmem:[%s2371_s17 + $0xac] sm:$0xf] }
  0x45   : > { %945 = vmatpush.bf16.msrb.mxu1 %v2212_v27  ;;  %v1896_v27 = vld [vmem:[%s2371_s17 + $0xb4] sm:$0xf0] }
  0x46   : > { %v1899_v29 = vor.u32 %v2176_v26, %v1896_v27 }
  0x49   : > { %946 = vmatpush.bf16.msrb.mxu1 %v2211_v28  ;;  %v1919_v28 = vor.u32 %v2183_v25, %v1918_v24 }
  0x4c   : > { %868 = vmatmul.bf16.gmra.mxu0 %v1835_v33  ;;  %947 = vmatmul.bf16.vlgmr.msrb.gmra.mxu1 %v1815_v34  ;;  %v1938_v34 = vld [vmem:[%s2371_s17 + $0xf8] sm:$0xf] }
  0x4d   : > { %v1939_v36 = vor.u32 %v2187_v35, %v1938_v34  ;;  %v1986_v34 = vld [vmem:[%s2371_s17 + $0x158] sm:$0xf]  ;;  %v2199_v35 = vld [vmem:[%s2371_s17 + $0x160] sm:$0xf0] }
  0x4e   : > { %2081 = vmatmul.msk.bf16.gmra.mxu2 %vm801_vm0, %v1927_v23  ;;  %v1944_v23 = vld [vmem:[%s2371_s17 + $0x114] sm:$0xf0] }
  0x4f   : > { %v1947_v25 = vor.u32 %v2188_v22, %v1944_v23 }
  0x5c   : > { %873 = vmatmul.bf16.gmra.mxu0 %v1847_v39  ;;  %952 = vmatmul.bf16.gmra.mxu1 %v1827_v40  ;;  %v2179_v39 = vld [vmem:[%s2371_s17 + $0xc4] sm:$0xf]  ;;  %v1908_v40 = vld [vmem:[%s2371_s17 + $0xcc] sm:$0xf0] }
  0x5d   : > { %v1911_v42 = vor.u32 %v2179_v39, %v1908_v40  ;;  %v1818_v39 = vld [vmem:[%s2371_s17 + $0x8] sm:$0xf]  ;;  %v2157_v40 = vld [vmem:[%s2371_s17 + $0x10] sm:$0xf0] }
  0x5e   : > { %2082 = vmatmul.msk.bf16.gmra.mxu2 %vm801_vm0, %v1939_v36  ;;  %v1987_v36 = vor.u32 %v2199_v35, %v1986_v34  ;;  %v1992_v35 = vld [vmem:[%s2371_s17 + $0x174] sm:$0xf0] }
  0x6c   : > { %878 = vmatmul.bf16.gmra.mxu0 %v1859_v45  ;;  %957 = vmatmul.bf16.gmra.mxu1 %v1839_v46 }
  0x7c   : > { %883 = vmatmul.bf16.gmra.mxu0 %v1871_v51  ;;  %962 = vmatmul.bf16.gmra.mxu1 %v1851_v52  ;;  %v1951_v51 = vor.u32 %v2190_v50, %v1950_v49  ;;  %v1942_v52 = vld [vmem:[%s2371_s17 + $0x108] sm:$0xf] }
  0x7d   : > { %v1943_v56 = vor.u32 %v2189_v53, %v1942_v52  ;;  %v2194_v52 = vld [vmem:[%s2371_s17 + $0x13c] sm:$0xf]  ;;  %v1968_v53 = vld [vmem:[%s2371_s17 + $0x144] sm:$0xf0] }
  0x7e   : > { %2083 = vmatmul.msk.bf16.vlgmr.msra.gmra.mxu3 %vm801_vm0, %v1951_v51 }
  0x8c   : > { %888 = vmatmul.bf16.gmra.mxu0 %v1883_v61  ;;  %967 = vmatmul.bf16.gmra.mxu1 %v1863_v62 }
  0x8e   : > { %2084 = vmatmul.msk.bf16.gmra.mxu3 %vm801_vm0, %v1963_v2 }
  0x9c   : > { %893 = vmatmul.bf16.gmra.mxu0 %v1895_v6  ;;  %972 = vmatmul.bf16.gmra.mxu1 %v1875_v7  ;;  %v1932_v6 = vld [vmem:[%s2371_s17 + $0xfc] sm:$0xf0]  ;;  %v1955_v7 = vor.u32 %v2192_v4, %v1954_v3 }
  0x9d   : > { %v1935_v8 = vor.u32 %v2185_v5, %v1932_v6 }
  0xa9   : > { %v859_v17 = vpop.f32.mrf.mxu0  ;;  %v2448_v18 = vpop.f32.mrf.mxu1 }
  0xac   : > { %898 = vmatmul.bf16.gmra.mxu0 %v1907_v15  ;;  %977 = vmatmul.bf16.gmra.mxu1 %v1887_v16  ;;  %v1974_v15 = vld [vmem:[%s2371_s17 + $0x140] sm:$0xf]  ;;  %v2196_v16 = vld [vmem:[%s2371_s17 + $0x148] sm:$0xf0] }
  0xb1   : > { %v861_v19 = vpop.f32.mrf.mxu0  ;;  %v2450_v20 = vpop.f32.mrf.mxu1 }
  0xb9   : > { %v864_v30 = vpop.f32.mrf.mxu0  ;;  %v2459_v31 = vpop.f32.mrf.mxu1 }
  0xbc   : > { %903 = vmatmul.bf16.gmra.mxu0 %v1919_v28  ;;  %982 = vmatmul.bf16.gmra.mxu1 %v1899_v29 }
  0xc1   : > { %v866_v32 = vpop.f32.mrf.mxu0  ;;  %v2461_v33 = vpop.f32.mrf.mxu1 }
  0xc9   : > { %v869_v43 = vpop.f32.mrf.mxu0  ;;  %v948_v44 = vpop.f32.mrf.mxu1 }
  0xca   : > { %v2470_v45 = vadd.f32 %v948_v44, %v859_v17  ;;  %v1975_v17 = vor.u32 %v2196_v16, %v1974_v15 }
  0xcc   : > { %908 = vmatmul.bf16.gmra.mxu0 %v1931_v41  ;;  %987 = vmatmul.bf16.gmra.mxu1 %v1911_v42  ;;  %v2292_v41 = vmov 0.0   ;;  %v1959_v42 = vor.u32 %v2191_v37, %v1956_v38  ;;  %v2166_v37 = vld [vmem:[%s2371_s17 + $0x58] sm:$0xf0] }
  0xcd   : > { %2085 = vmatmul.msk.bf16.gmra.mxu3 %vm801_vm0, %v1975_v17  ;;  %301 = vst.msk [vmem:[#allocation2 + $0x60] sm:$0xff] %vm288_vm1, %v2292_v41 }
  0xce   : > { %289 = vst.msk [vmem:[#allocation2] sm:$0xff] %vm288_vm1, %v2292_v41 }
  0xcf   : > { %290 = vst.msk [vmem:[#allocation2 + $0x8] sm:$0xff] %vm288_vm1, %v2292_v41 }
  0xd0   : > { %291 = vst.msk [vmem:[#allocation2 + $0x10] sm:$0xff] %vm288_vm1, %v2292_v41 }
  0xd1   : > { %v871_v46 = vpop.f32.mrf.mxu0  ;;  %v950_v47 = vpop.f32.mrf.mxu1  ;;  %292 = vst.msk [vmem:[#allocation2 + $0x18] sm:$0xff] %vm288_vm1, %v2292_v41 }
  0xd2   : > { %v2472_v48 = vadd.f32 %v950_v47, %v861_v19  ;;  %v1966_v19 = vld [vmem:[%s2371_s17 + $0x138] sm:$0xf]  ;;  %293 = vst.msk [vmem:[#allocation2 + $0x20] sm:$0xff] %vm288_vm1, %v2292_v41 }
  0xd3   : > { %v1967_v24 = vor.u32 %v2195_v21, %v1966_v19  ;;  %294 = vst.msk [vmem:[#allocation2 + $0x28] sm:$0xff] %vm288_vm1, %v2292_v41 }
  0xd4   : > { %295 = vst.msk [vmem:[#allocation2 + $0x30] sm:$0xff] %vm288_vm1, %v2292_v41  ;;  %v333_v21 = vld [vmem:[#allocation2 + $0x60] sm:$0xff] }
  0xd5   : > { %296 = vst.msk [vmem:[#allocation2 + $0x38] sm:$0xff] %vm288_vm1, %v2292_v41 }
  0xd6   : > { %297 = vst.msk [vmem:[#allocation2 + $0x40] sm:$0xff] %vm288_vm1, %v2292_v41 }
  0xd7   : > { %298 = vst.msk [vmem:[#allocation2 + $0x48] sm:$0xff] %vm288_vm1, %v2292_v41 }
  0xd8   : > { %299 = vst.msk [vmem:[#allocation2 + $0x50] sm:$0xff] %vm288_vm1, %v2292_v41 }
  0xd9   : > { %v874_v58 = vpop.f32.mrf.mxu0  ;;  %v953_v59 = vpop.f32.mrf.mxu1  ;;  %300 = vst.msk [vmem:[#allocation2 + $0x58] sm:$0xff] %vm288_vm1, %v2292_v41 }
  0xda   : > { %v2481_v60 = vadd.f32 %v953_v59, %v864_v30  ;;  %302 = vst.msk [vmem:[#allocation2 + $0x68] sm:$0xff] %vm288_vm1, %v2292_v41 }
  0xdb   : > { %303 = vst.msk [vmem:[#allocation2 + $0x70] sm:$0xff] %vm288_vm1, %v2292_v41 }
  0xdc   : > { %913 = vmatmul.bf16.gmra.mxu0 %v1943_v56  ;;  %992 = vmatmul.bf16.gmra.mxu1 %v1923_v57  ;;  %304 = vst.msk [vmem:[#allocation2 + $0x78] sm:$0xff] %vm288_vm1, %v2292_v41  ;;  %v1998_v56 = vld [vmem:[%s2371_s17 + $0x170] sm:$0xf]  ;;  %v2202_v57 = vld [vmem:[%s2371_s17 + $0x178] sm:$0xf0] }
  0xdd   : > { %2086 = vmatmul.msk.bf16.gmra.mxu3 %vm801_vm0, %v1987_v36  ;;  %305 = vst.msk [vmem:[#allocation2 + $0x80] sm:$0xff] %vm288_vm1, %v2292_v41  ;;  %v1999_v59 = vor.u32 %v2202_v57, %v1998_v56  ;;  %v1854_v36 = vld [vmem:[%s2371_s17 + $0x50] sm:$0xf] }
  0xde   : > { %306 = vst.msk [vmem:[#allocation2 + $0x88] sm:$0xff] %vm288_vm1, %v2292_v41 }
  0xdf   : > { %307 = vst.msk [vmem:[#allocation2 + $0x90] sm:$0xff] %vm288_vm1, %v2292_v41 }
  0xe0   : > { %308 = vst.msk [vmem:[#allocation2 + $0x98] sm:$0xff] %vm288_vm1, %v2292_v41 }
  0xe1   : > { %v876_v61 = vpop.f32.mrf.mxu0  ;;  %v955_v62 = vpop.f32.mrf.mxu1  ;;  %309 = vst.msk [vmem:[#allocation2 + $0xa0] sm:$0xff] %vm288_vm1, %v2292_v41 }
  0xe2   : > { %v2483_v63 = vadd.f32 %v955_v62, %v866_v32  ;;  %v1831_v62 = vor.u32 %v2160_v55, %v1830_v54  ;;  %310 = vst.msk [vmem:[#allocation2 + $0xa8] sm:$0xff] %vm288_vm1, %v2292_v41  ;;  %v335_v54 = vld [vmem:[#allocation2 + $0x70] sm:$0xff] }
  0xe3   : > { %311 = vst.msk [vmem:[#allocation2 + $0xb0] sm:$0xff] %vm288_vm1, %v2292_v41 }
  0xe4   : > { %312 = vst.msk [vmem:[#allocation2 + $0xb8] sm:$0xff] %vm288_vm1, %v2292_v41 }
  0xe5   : > { %313 = vst.msk [vmem:[#allocation2 + $0xc0] sm:$0xff] %vm288_vm1, %v2292_v41 }
  0xe6   : > { %314 = vst.msk [vmem:[#allocation2 + $0xc8] sm:$0xff] %vm288_vm1, %v2292_v41 }
  0xe7   : > { %315 = vst.msk [vmem:[#allocation2 + $0xd0] sm:$0xff] %vm288_vm1, %v2292_v41 }
  0xe8   : > { %316 = vst.msk [vmem:[#allocation2 + $0xd8] sm:$0xff] %vm288_vm1, %v2292_v41 }
  0xe9   : > { %v879_v9 = vpop.f32.mrf.mxu0  ;;  %v958_v10 = vpop.f32.mrf.mxu1  ;;  %317 = vst.msk [vmem:[#allocation2 + $0xe0] sm:$0xff] %vm288_vm1, %v2292_v41 }
  0xea   : > { %v2492_v11 = vadd.f32 %v958_v10, %v869_v43  ;;  %v1819_v43 = vor.u32 %v2157_v40, %v1818_v39  ;;  %318 = vst.msk [vmem:[#allocation2 + $0xe8] sm:$0xff] %vm288_vm1, %v2292_v41  ;;  %v2163_v10 = vld [vmem:[%s2371_s17 + $0x40] sm:$0xf0]  ;;  %v1855_v40 = vor.u32 %v2166_v37, %v1854_v36  ;;  %v2172_v36 = vld [vmem:[%s2371_s17 + $0x88] sm:$0xf0] }
  0xeb   : > { %319 = vst.msk [vmem:[#allocation2 + $0xf0] sm:$0xff] %vm288_vm1, %v2292_v41 }
  0xec   : > { %918 = vmatmul.bf16.gmra.mxu0 %v1955_v7  ;;  %997 = vmatmul.bf16.gmra.mxu1 %v1935_v8  ;;  %v2197_v7 = vld [vmem:[%s2371_s17 + $0x154] sm:$0xf]  ;;  %v1980_v8 = vld [vmem:[%s2371_s17 + $0x15c] sm:$0xf0]  ;;  %320 = vst.msk [vmem:[#allocation2 + $0xf8] sm:$0xff] %vm288_vm1, %v2292_v41 }
  0xed   : > { %2087 = vmatmul.msk.bf16.gmra.mxu3 %vm801_vm0, %v1999_v59  ;;  %v2114_v41 = vld [vmem:[%s2935_s3 + $0x30] sm:$0xf] }
  0xf1   : > { %v881_v12 = vpop.f32.mrf.mxu0  ;;  %v960_v13 = vpop.f32.mrf.mxu1 }
  0xf2   : > { %v2494_v14 = vadd.f32 %v960_v13, %v871_v46 }
  0xf9   : > { %v884_v26 = vpop.f32.mrf.mxu0  ;;  %v963_v27 = vpop.f32.mrf.mxu1 }
  0xfa   : > { %v2503_v28 = vadd.f32 %v963_v27, %v874_v58  ;;  %v1067_v58 = vpop.f32.mrf.mxu2  ;;  %v334_v27 = vld [vmem:[#allocation2 + $0x68] sm:$0xff] }
  0xfc   : > { %923 = vmatmul.bf16.gmra.mxu0 %v1967_v24  ;;  %1002 = vmatmul.bf16.gmra.mxu1 %v1947_v25 }
 0x101   : > { %v2505_v29 = vpop.f32.mrf.mxu0  ;;  %v965_v30 = vpop.f32.mrf.mxu1 }
 0x102   : > { %v2507_v32 = vadd.f32 %v965_v30, %v876_v61  ;;  %v1971_v61 = vor.u32 %v2194_v52, %v1968_v53  ;;  %v1069_v3 = vpop.f32.mrf.mxu2  ;;  %v2200_v30 = vld [vmem:[%s2371_s17 + $0x16c] sm:$0xf] }
 0x103   : > { %v1995_v39 = vor.u32 %v2200_v30, %v1992_v35  ;;  %v338_v30 = vld [vmem:[#allocation2 + $0x88] sm:$0xff]  ;;  %v1878_v35 = vld [vmem:[%s2371_s17 + $0x80] sm:$0xf] }
 0x109   : > { %v2522_v44 = vpop.f32.mrf.mxu0  ;;  %v968_v46 = vpop.f32.mrf.mxu1 }
 0x10a   : > { %v2526_v47 = vadd.f32 %v968_v46, %v879_v9  ;;  %v1842_v9 = vld [vmem:[%s2371_s17 + $0x38] sm:$0xf]  ;;  %v1072_v19 = vpop.f32.mrf.mxu2 }
 0x10b   : > { %v1843_v13 = vor.u32 %v2163_v10, %v1842_v9 }
 0x10c   : > { %1007 = vmatmul.bf16.gmra.mxu1 %v1959_v42  ;;  %2072 = vmatmul.msk.bf16.vlgmr.msrb.gmra.mxu0 %vm801_vm0, %v1819_v43  ;;  %v2228_v42 = vld [vmem:[%s2935_s3 + $0x34] sm:$0xf0] }
 0x10d   : > { %v2115_v46 = vor.u32 %v2228_v42, %v2114_v41  ;;  %v339_v42 = vld [vmem:[#allocation2 + $0x90] sm:$0xff] }
 0x10f   : > { %1471 = vmatpush.bf16.msrb.mxu3 %v2115_v46 }
 0x111   : > { %v891_v49 = vpop.f32.mrf.mxu0  ;;  %v970_v50 = vpop.f32.mrf.mxu1 }
 0x112   : > { %v2545_v51 = vadd.f32 %v970_v50, %v881_v12  ;;  %v1983_v12 = vor.u32 %v2197_v7, %v1980_v8  ;;  %v1074_v34 = vpop.f32.mrf.mxu2  ;;  %v2116_v50 = vld [vmem:[%s2935_s3 + $0x38] sm:$0xf0] }
 0x119   : > { %v894_v0 = vpop.f32.mrf.mxu0  ;;  %v973_v1 = vpop.f32.mrf.mxu1 }
 0x11a   : > { %v2570_v2 = vadd.f32 %v973_v1, %v884_v26  ;;  %v1077_v57 = vpop.f32.mrf.mxu2 }
 0x11c   : > { %1012 = vmatmul.bf16.gmra.mxu1 %v1971_v61  ;;  %2073 = vmatmul.msk.bf16.gmra.mxu0 %vm801_vm0, %v1831_v62  ;;  %v336_v62 = vld [vmem:[#allocation2 + $0x78] sm:$0xff] }
 0x121   : > { %v896_v4 = vpop.f32.mrf.mxu0  ;;  %v975_v5 = vpop.f32.mrf.mxu1 }
 0x122   : > { %v2590_v6 = vadd.f32 %v975_v5, %v2505_v29  ;;  %v1079_v8 = vpop.f32.mrf.mxu2 }
 0x129   : > { %v899_v15 = vpop.f32.mrf.mxu0  ;;  %v978_v16 = vpop.f32.mrf.mxu1 }
 0x12a   : > { %v979_v17 = vadd.f32 %v978_v16, %v2522_v44  ;;  %v2225_v16 = vld [vmem:[%s2935_s3 + $0x24] sm:$0xf] }
 0x12c   : > { %v1068_v22 = vadd.f32 %v1067_v58, %v979_v17  ;;  %1017 = vmatmul.bf16.gmra.mxu1 %v1983_v12  ;;  %2074 = vmatmul.msk.bf16.gmra.mxu0 %vm801_vm0, %v1843_v13  ;;  %v2106_v13 = vld [vmem:[%s2935_s3 + $0x20] sm:$0xf] }
 0x12d   : > { %v337_v17 = vld [vmem:[#allocation2 + $0x80] sm:$0xff] }
 0x12e   : > { %v1129_v23 = vadd.f32 %v1068_v22, %v333_v21 }
 0x130   : > { %1162 = vst.msk [vmem:[#allocation2 + $0x60] sm:$0xff] %vm288_vm1, %v1129_v23 }
 0x131   : > { %v901_v24 = vpop.f32.mrf.mxu0  ;;  %v980_v25 = vpop.f32.mrf.mxu1 }
 0x132   : > { %v981_v26 = vadd.f32 %v980_v25, %v891_v49  ;;  %v2227_v49 = vld [vmem:[%s2935_s3 + $0x34] sm:$0xf] }
 0x133   : > { %v2119_v53 = vor.u32 %v2227_v49, %v2116_v50  ;;  %v2224_v50 = vld [vmem:[%s2935_s3 + $0x14] sm:$0xf0] }
 0x134   : > { %v1070_v29 = vadd.f32 %v1069_v3, %v981_v26  ;;  %v2169_v3 = vld [vmem:[%s2371_s17 + $0x70] sm:$0xf0] }
 0x135   : > { %1560 = vmatpush.bf16.msrb.mxu2 %v2119_v53 }
 0x136   : > { %v1130_v38 = vadd.f32 %v1070_v29, %v334_v27  ;;  %v1082_v29 = vpop.f32.mrf.mxu2 }
 0x138   : > { %1163 = vst.msk [vmem:[#allocation2 + $0x68] sm:$0xff] %vm288_vm1, %v1130_v38  ;;  %v1879_v38 = vor.u32 %v2172_v36, %v1878_v35  ;;  %v343_v36 = vld [vmem:[#allocation2 + $0xb0] sm:$0xff] }
 0x139   : > { %v904_v43 = vpop.f32.mrf.mxu0  ;;  %v983_v44 = vpop.f32.mrf.mxu1 }
 0x13a   : > { %v984_v52 = vadd.f32 %v983_v44, %v894_v0  ;;  %v1866_v0 = vld [vmem:[%s2371_s17 + $0x68] sm:$0xf]  ;;  %s2765_s17 = scalar_lea.vmem %s2937_s5, %s2154_s12 }
 0x13b   : > { %v1867_v7 = vor.u32 %v2169_v3, %v1866_v0  ;;  %v1092_v0 = vpop.f32.mrf.mxu3 }
 0x13c   : > { %v1073_v55 = vadd.f32 %v1072_v19, %v984_v52  ;;  %1022 = vmatmul.bf16.gmra.mxu1 %v1995_v39  ;;  %2075 = vmatmul.msk.bf16.gmra.mxu0 %vm801_vm0, %v1855_v40 }
 0x13e   : > { %v1131_v56 = vadd.f32 %v1073_v55, %v335_v54  ;;  %v1084_v46 = vpop.f32.mrf.mxu2  ;;  %v2100_v55 = vld [vmem:[%s2935_s3 + $0x18] sm:$0xf0] }
 0x140   : > { %1164 = vst.msk [vmem:[#allocation2 + $0x70] sm:$0xff] %vm288_vm1, %v1131_v56 }
 0x141   : > { %v906_v58 = vpop.f32.mrf.mxu0  ;;  %v985_v59 = vpop.f32.mrf.mxu1 }
 0x142   : > { %v986_v61 = vadd.f32 %v985_v59, %v896_v4  ;;  %v2226_v4 = vld [vmem:[%s2935_s3 + $0x24] sm:$0xf0]  ;;  %v340_v59 = vld [vmem:[#allocation2 + $0x98] sm:$0xff] }
 0x143   : > { %v2107_v19 = vor.u32 %v2226_v4, %v2106_v13 }
 0x144   : > { %v1075_v1 = vadd.f32 %v1074_v34, %v986_v61 }
 0x145   : > { %1472 = vmatpush.bf16.msrb.mxu3 %v2107_v19  ;;  %v342_v19 = vld [vmem:[#allocation2 + $0xa8] sm:$0xff] }
 0x146   : > { %v1132_v5 = vadd.f32 %v1075_v1, %v336_v62  ;;  %v1087_v1 = vpop.f32.mrf.mxu2 }
 0x148   : > { %1165 = vst.msk [vmem:[#allocation2 + $0x78] sm:$0xff] %vm288_vm1, %v1132_v5 }
 0x149   : > { %v909_v9 = vpop.f32.mrf.mxu0  ;;  %v988_v10 = vpop.f32.mrf.mxu1 }
 0x14a   : > { %v989_v12 = vadd.f32 %v988_v10, %v899_v15  ;;  %v2108_v15 = vld [vmem:[%s2935_s3 + $0x28] sm:$0xf0] }
 0x14b   : > { %v2111_v22 = vor.u32 %v2225_v16, %v2108_v15 }
 0x14c   : > { %v1078_v21 = vadd.f32 %v1077_v57, %v989_v12  ;;  %2076 = vmatmul.msk.bf16.gmra.mxu0 %vm801_vm0, %v1867_v7 }
 0x14d   : > { %1561 = vmatpush.bf16.msrb.mxu2 %v2111_v22  ;;  %v2090_v22 = vld [vmem:[%s2935_s3] sm:$0xf] }
 0x14e   : > { %v1133_v23 = vadd.f32 %v1078_v21, %v337_v17  ;;  %v1089_v13 = vpop.f32.mrf.mxu2 }
 0x150   : > { %1166 = vst.msk [vmem:[#allocation2 + $0x80] sm:$0xff] %vm288_vm1, %v1133_v23  ;;  %v2221_v23 = vld [vmem:[%s2935_s3 + $0x4] sm:$0xf] }
 0x151   : > { %v911_v25 = vpop.f32.mrf.mxu0  ;;  %v990_v26 = vpop.f32.mrf.mxu1 }
 0x152   : > { %v991_v27 = vadd.f32 %v990_v26, %v901_v24  ;;  %v2098_v24 = vld [vmem:[%s2935_s3 + $0x10] sm:$0xf] }
 0x153   : > { %v2099_v54 = vor.u32 %v2224_v50, %v2098_v24 }
 0x154   : > { %v1080_v34 = vadd.f32 %v1079_v8, %v991_v27  ;;  %v341_v8 = vld [vmem:[#allocation2 + $0xa0] sm:$0xff] }
 0x155   : > { %1473 = vmatpush.bf16.msrb.mxu3 %v2099_v54 }
 0x156   : > { %v1134_v37 = vadd.f32 %v1080_v34, %v338_v30 }
 0x158   : > { %1167 = vst.msk [vmem:[#allocation2 + $0x88] sm:$0xff] %vm288_vm1, %v1134_v37 }
 0x159   : > { %v914_v39 = vpop.f32.mrf.mxu0  ;;  %v993_v40 = vpop.f32.mrf.mxu1 }
 0x15a   : > { %v994_v41 = vadd.f32 %v993_v40, %v904_v43  ;;  %v2223_v43 = vld [vmem:[%s2935_s3 + $0x14] sm:$0xf] }
 0x15b   : > { %v2103_v57 = vor.u32 %v2223_v43, %v2100_v55  ;;  %v345_v55 = vld [vmem:[#allocation2 + $0xc0] sm:$0xff] }
 0x15c   : > { %v1083_v44 = vadd.f32 %v1082_v29, %v994_v41  ;;  %2077 = vmatmul.msk.bf16.gmra.mxu0 %vm801_vm0, %v1879_v38 }
 0x15d   : > { %1562 = vmatpush.bf16.msrb.mxu2 %v2103_v57 }
 0x15e   : > { %v1135_v49 = vadd.f32 %v1083_v44, %v339_v42  ;;  %v344_v44 = vld [vmem:[#allocation2 + $0xb8] sm:$0xff] }
 0x160   : > { %1168 = vst.msk [vmem:[#allocation2 + $0x90] sm:$0xff] %vm288_vm1, %v1135_v49 }
 0x161   : > { %v916_v52 = vpop.f32.mrf.mxu0  ;;  %v995_v53 = vpop.f32.mrf.mxu1 }
 0x162   : > { %v996_v56 = vadd.f32 %v995_v53, %v906_v58  ;;  %v1094_v58 = vpop.f32.mrf.mxu3  ;;  %v321_v53 = vld [vmem:[#allocation2] sm:$0xff] }
 0x164   : > { %v1085_v61 = vadd.f32 %v1084_v46, %v996_v56 }
 0x166   : > { %v1136_v62 = vadd.f32 %v1085_v61, %v340_v59 }
 0x168   : > { %1169 = vst.msk [vmem:[#allocation2 + $0x98] sm:$0xff] %vm288_vm1, %v1136_v62  ;;  %v322_v62 = vld [vmem:[#allocation2 + $0x8] sm:$0xff] }
 0x169   : > { %v919_v3 = vpop.f32.mrf.mxu0  ;;  %v998_v5 = vpop.f32.mrf.mxu1 }
 0x16a   : > { %v999_v7 = vadd.f32 %v998_v5, %v909_v9  ;;  %v2222_v9 = vld [vmem:[%s2935_s3 + $0x4] sm:$0xf0]  ;;  %v1097_v35 = vpop.f32.mrf.mxu3 }
 0x16b   : > { %v2091_v26 = vor.u32 %v2222_v9, %v2090_v22 }
 0x16c   : > { %v1088_v10 = vadd.f32 %v1087_v1, %v999_v7  ;;  %v346_v7 = vld [vmem:[#allocation2 + $0xc8] sm:$0xff] }
 0x16d   : > { %1474 = vmatpush.bf16.msrb.mxu3 %v2091_v26 }
 0x16e   : > { %v1137_v12 = vadd.f32 %v1088_v10, %v341_v8 }
 0x170   : > { %1170 = vst.msk [vmem:[#allocation2 + $0xa0] sm:$0xff] %vm288_vm1, %v1137_v12 }
 0x171   : > { %v921_v4 = vpop.f32.mrf.mxu0  ;;  %v1000_v16 = vpop.f32.mrf.mxu1 }
 0x172   : > { %v1001_v17 = vadd.f32 %v1000_v16, %v911_v25  ;;  %v2092_v25 = vld [vmem:[%s2935_s3 + $0x8] sm:$0xf0]  ;;  %v1099_v49 = vpop.f32.mrf.mxu3  ;;  %v323_v16 = vld [vmem:[#allocation2 + $0x10] sm:$0xff] }
 0x173   : > { %v2095_v27 = vor.u32 %v2221_v23, %v2092_v25 }
 0x174   : > { %v1090_v15 = vadd.f32 %v1089_v13, %v1001_v17  ;;  %v2686_v13 = vld [vmem:[%s2934_s2] ss:$0 sm:$0xff] }
 0x175   : > { %1563 = vmatpush.bf16.msrb.mxu2 %v2095_v27 }
 0x176   : > { %v1138_v21 = vadd.f32 %v1090_v15, %v342_v19  ;;  %v347_v15 = vld [vmem:[#allocation2 + $0xd0] sm:$0xff] }
 0x178   : > { %1171 = vst.msk [vmem:[#allocation2 + $0xa8] sm:$0xff] %vm288_vm1, %v1138_v21 }
 0x179   : > { %v924_v29 = vpop.f32.mrf.mxu0  ;;  %v1003_v30 = vpop.f32.mrf.mxu1 }
 0x17a   : > { %v1004_v34 = vadd.f32 %v1003_v30, %v914_v39  ;;  %v1102_v61 = vpop.f32.mrf.mxu3  ;;  %v324_v30 = vld [vmem:[#allocation2 + $0x18] sm:$0xff] }
 0x17c   : > { %v1093_v37 = vadd.f32 %v1092_v0, %v1004_v34 }
 0x17e   : > { %v1139_v38 = vadd.f32 %v1093_v37, %v343_v36 }
 0x180   : > { %1172 = vst.msk [vmem:[#allocation2 + $0xb0] sm:$0xff] %vm288_vm1, %v1139_v38 }
 0x181   : > { %v926_v40 = vpop.f32.mrf.mxu0  ;;  %v1005_v41 = vpop.f32.mrf.mxu1 }
 0x182   : > { %v1006_v42 = vadd.f32 %v1005_v41, %v916_v52  ;;  %v1104_v12 = vpop.f32.mrf.mxu3  ;;  %v348_v41 = vld [vmem:[#allocation2 + $0xd8] sm:$0xff] }
 0x184   : > { %v1095_v46 = vadd.f32 %v1094_v58, %v1006_v42 }
 0x186   : > { %v1140_v24 = vadd.f32 %v1095_v46, %v344_v44 }
 0x188   : > { %1173 = vst.msk [vmem:[#allocation2 + $0xb8] sm:$0xff] %vm288_vm1, %v1140_v24 }
 0x189   : > { %v1008_v50 = vpop.f32.mrf.mxu1  ;;  %v1037_v54 = vpop.f32.mrf.mxu0 }
 0x18a   : > { %v1009_v39 = vadd.f32 %v1008_v50, %v919_v3  ;;  %v1038_v43 = vadd.f32 %v1037_v54, %v2470_v45  ;;  %v1107_v38 = vpop.f32.mrf.mxu3  ;;  %v325_v50 = vld [vmem:[#allocation2 + $0x20] sm:$0xff] }
 0x18c   : > { %v1117_v56 = vadd.f32 %v1038_v43, %v321_v53  ;;  %v1098_v57 = vadd.f32 %v1097_v35, %v1009_v39  ;;  %v349_v43 = vld [vmem:[#allocation2 + $0xe0] sm:$0xff] }
 0x18e   : > { %1150 = vst.msk [vmem:[#allocation2] sm:$0xff] %vm288_vm1, %v1117_v56  ;;  %v1141_v59 = vadd.f32 %v1098_v57, %v345_v55 }
 0x190   : > { %1174 = vst.msk [vmem:[#allocation2 + $0xc0] sm:$0xff] %vm288_vm1, %v1141_v59 }
 0x191   : > { %v1010_v52 = vpop.f32.mrf.mxu1  ;;  %v1039_v1 = vpop.f32.mrf.mxu0 }
 0x192   : > { %v1011_v0 = vadd.f32 %v1010_v52, %v921_v4  ;;  %v1040_v5 = vadd.f32 %v1039_v1, %v2472_v48  ;;  %v1109_v57 = vpop.f32.mrf.mxu3 }
 0x194   : > { %v1118_v8 = vadd.f32 %v1040_v5, %v322_v62  ;;  %v1100_v3 = vadd.f32 %v1099_v49, %v1011_v0 }
 0x195   : > { %v1185_v10 = vld [vmem:[#allocation2] sm:$0xff] }
 0x196   : > { %1151 = vst.msk [vmem:[#allocation2 + $0x8] sm:$0xff] %vm288_vm1, %v1118_v8  ;;  %v1142_v45 = vadd.f32 %v1100_v3, %v346_v7  ;;  %v1221_v19 = vadd.f32 %v2686_v13, %v1185_v10 }
 0x198   : > { %1175 = vst.msk [vmem:[#allocation2 + $0xc8] sm:$0xff] %vm288_vm1, %v1142_v45  ;;  %v1285_v25 = vmul.f32 0.1, %v1221_v19  ;;  %vm1253_vm2 = vcmp.gt.f32.partialorder %v1221_v19, 0.0  ;;  %v350_v45 = vld [vmem:[#allocation2 + $0xe8] sm:$0xff] }
 0x199   : > { %v1013_v58 = vpop.f32.mrf.mxu1  ;;  %v1042_v4 = vpop.f32.mrf.mxu0 }
 0x19a   : > { %v1014_v17 = vadd.f32 %v1013_v58, %v924_v29  ;;  %v1043_v48 = vadd.f32 %v1042_v4, %v2481_v60  ;;  %v1317_v36 = vsel %vm1253_vm2, %v1221_v19, %v1285_v25  ;;  %v1112_v4 = vpop.f32.mrf.mxu3 }
 0x19c   : > { %v1119_v21 = vadd.f32 %v1043_v48, %v323_v16  ;;  %v1103_v22 = vadd.f32 %v1102_v61, %v1014_v17  ;;  %v327_v48 = vld [vmem:[#allocation2 + $0x30] sm:$0xff] }
 0x19d   : > { %v1186_v9 = vld [vmem:[#allocation2 + $0x8] sm:$0xff] }
 0x19e   : > { %1152 = vst.msk [vmem:[#allocation2 + $0x10] sm:$0xff] %vm288_vm1, %v1119_v21  ;;  %v1143_v23 = vadd.f32 %v1103_v22, %v347_v15  ;;  %v1222_v26 = vadd.f32 %v2686_v13, %v1186_v9  ;;  %v351_v22 = vld [vmem:[#allocation2 + $0xf0] sm:$0xff] }
 0x1a0   : > { %1176 = vst.msk [vmem:[#allocation2 + $0xd0] sm:$0xff] %vm288_vm1, %v1143_v23  ;;  %vm1254_vm3 = vcmp.gt.f32.partialorder %v1222_v26, 0.0  ;;  %v1286_v27 = vmul.f32 0.1, %v1222_v26 }
 0x1a1   : > { %v1015_v29 = vpop.f32.mrf.mxu1  ;;  %v1044_v60 = vpop.f32.mrf.mxu0 }
 0x1a2   : > { %v1016_v34 = vadd.f32 %v1015_v29, %v926_v40  ;;  %v1045_v35 = vadd.f32 %v1044_v60, %v2483_v63  ;;  %v1318_v37 = vsel %vm1254_vm3, %v1222_v26, %v1286_v27 }
 0x1a3   : > { %v1349_v42 = vpack.c.bf16 %v1318_v37, %v1317_v36 }
 0x1a4   : > { %v1120_v44 = vadd.f32 %v1045_v35, %v324_v30  ;;  %v1105_v46 = vadd.f32 %v1104_v12, %v1016_v34  ;;  %v1114_v30 = vpop.f32.mrf.mxu3 }
 0x1a5   : > { %2120 = vmatmul.msk.bf16.vlgmr.msrb.gmra.mxu3 %vm288_vm1, %v1349_v42  ;;  %2136 = vmatmul.msk.bf16.vlgmr.msrb.gmra.mxu2 %vm288_vm1, %v1349_v42  ;;  %v1187_v24 = vld [vmem:[#allocation2 + $0x10] sm:$0xff] }
 0x1a6   : > { %1153 = vst.msk [vmem:[#allocation2 + $0x18] sm:$0xff] %vm288_vm1, %v1120_v44  ;;  %v1144_v49 = vadd.f32 %v1105_v46, %v348_v41  ;;  %v1223_v39 = vadd.f32 %v2686_v13, %v1187_v24  ;;  %v352_v41 = vld [vmem:[#allocation2 + $0xf8] sm:$0xff] }
 0x1a8   : > { %1177 = vst.msk [vmem:[#allocation2 + $0xd8] sm:$0xff] %vm288_vm1, %v1144_v49  ;;  %v1287_v62 = vmul.f32 0.1, %v1223_v39  ;;  %vm1255_vm4 = vcmp.gt.f32.partialorder %v1223_v39, 0.0 }
 0x1a9   : > { %v1018_v40 = vpop.f32.mrf.mxu1  ;;  %v1047_v63 = vpop.f32.mrf.mxu0 }
 0x1aa   : > { %v1019_v53 = vadd.f32 %v1018_v40, %v2448_v18  ;;  %v1048_v54 = vadd.f32 %v1047_v63, %v2492_v11  ;;  %v326_v11 = vld [vmem:[#allocation2 + $0x28] sm:$0xff]  ;;  %v1319_v8 = vsel %vm1255_vm4, %v1223_v39, %v1287_v62  ;;  %v329_v40 = vld [vmem:[#allocation2 + $0x40] sm:$0xff] }
 0x1ac   : > { %v1121_v55 = vadd.f32 %v1048_v54, %v325_v50  ;;  %v1108_v56 = vadd.f32 %v1107_v38, %v1019_v53 }
 0x1ad   : > { %v1188_v59 = vld [vmem:[#allocation2 + $0x18] sm:$0xff] }
 0x1ae   : > { %1154 = vst.msk [vmem:[#allocation2 + $0x20] sm:$0xff] %vm288_vm1, %v1121_v55  ;;  %v1145_v61 = vadd.f32 %v1108_v56, %v349_v43  ;;  %v1224_v52 = vadd.f32 %v2686_v13, %v1188_v59  ;;  %v330_v55 = vld [vmem:[#allocation2 + $0x48] sm:$0xff] }
 0x1b0   : > { %1178 = vst.msk [vmem:[#allocation2 + $0xe0] sm:$0xff] %vm288_vm1, %v1145_v61  ;;  %vm1256_vm5 = vcmp.gt.f32.partialorder %v1224_v52, 0.0  ;;  %v1288_v18 = vmul.f32 0.1, %v1224_v52 }
 0x1b1   : > { %v1020_v1 = vpop.f32.mrf.mxu1  ;;  %v1049_v0 = vpop.f32.mrf.mxu0 }
 0x1b2   : > { %v1021_v5 = vadd.f32 %v1020_v1, %v2450_v20  ;;  %v1050_v7 = vadd.f32 %v1049_v0, %v2494_v14  ;;  %v1320_v3 = vsel %vm1256_vm5, %v1224_v52, %v1288_v18  ;;  %v331_v18 = vld [vmem:[#allocation2 + $0x50] sm:$0xff] }
 0x1b3   : > { %v1350_v10 = vpack.c.bf16 %v1320_v3, %v1319_v8 }
 0x1b4   : > { %v1122_v12 = vadd.f32 %v1050_v7, %v326_v11  ;;  %v1110_v58 = vadd.f32 %v1109_v57, %v1021_v5 }
 0x1b5   : > { %2121 = vmatmul.msk.bf16.gmra.mxu3 %vm288_vm1, %v1350_v10  ;;  %2137 = vmatmul.msk.bf16.gmra.mxu2 %vm288_vm1, %v1350_v10  ;;  %v1189_v17 = vld [vmem:[#allocation2 + $0x20] sm:$0xff] }
 0x1b6   : > { %1155 = vst.msk [vmem:[#allocation2 + $0x28] sm:$0xff] %vm288_vm1, %v1122_v12  ;;  %v1146_v16 = vadd.f32 %v1110_v58, %v350_v45  ;;  %v1225_v21 = vadd.f32 %v2686_v13, %v1189_v17  ;;  %v332_v45 = vld [vmem:[#allocation2 + $0x58] sm:$0xff] }
 0x1b8   : > { %1179 = vst.msk [vmem:[#allocation2 + $0xe8] sm:$0xff] %vm288_vm1, %v1146_v16  ;;  %v1289_v29 = vmul.f32 0.1, %v1225_v21  ;;  %vm1257_vm6 = vcmp.gt.f32.partialorder %v1225_v21, 0.0 }
 0x1b9   : > { %v1023_v20 = vpop.f32.mrf.mxu1  ;;  %v1052_v14 = vpop.f32.mrf.mxu0 }
 0x1ba   : > { %v1024_v19 = vadd.f32 %v1023_v20, %v2459_v31  ;;  %v1053_v15 = vadd.f32 %v1052_v14, %v2503_v28  ;;  %v328_v28 = vld [vmem:[#allocation2 + $0x38] sm:$0xff]  ;;  %v1321_v37 = vsel %vm1257_vm6, %v1225_v21, %v1289_v29 }
 0x1bc   : > { %v1123_v9 = vadd.f32 %v1053_v15, %v327_v48  ;;  %v1113_v23 = vadd.f32 %v1112_v4, %v1024_v19 }
 0x1bd   : > { %v1190_v26 = vld [vmem:[#allocation2 + $0x28] sm:$0xff] }
 0x1be   : > { %1156 = vst.msk [vmem:[#allocation2 + $0x30] sm:$0xff] %vm288_vm1, %v1123_v9  ;;  %v1147_v25 = vadd.f32 %v1113_v23, %v351_v22  ;;  %v1226_v27 = vadd.f32 %v2686_v13, %v1190_v26  ;;  %v1198_v9 = vld [vmem:[#allocation2 + $0x68] sm:$0xff]  ;;  %v1197_v23 = vld [vmem:[#allocation2 + $0x60] sm:$0xff] }
 0x1bf   : > { %v1234_v26 = vadd.f32 %v2686_v13, %v1198_v9 }
 0x1c0   : > { %1180 = vst.msk [vmem:[#allocation2 + $0xf0] sm:$0xff] %vm288_vm1, %v1147_v25  ;;  %vm1258_vm7 = vcmp.gt.f32.partialorder %v1226_v27, 0.0  ;;  %v1290_v31 = vmul.f32 0.1, %v1226_v27  ;;  %v1233_v25 = vadd.f32 %v2686_v13, %v1197_v23  ;;  %v1208_v23 = vld [vmem:[#allocation2 + $0xb8] sm:$0xff] }
 0x1c1   : > { %v1025_v60 = vpop.f32.mrf.mxu1  ;;  %v1054_v34 = vpop.f32.mrf.mxu0  ;;  %vm1266_vm14 = vcmp.gt.f32.partialorder %v1234_v26, 0.0 }
 0x1c2   : > { %v1026_v35 = vadd.f32 %v1025_v60, %v2461_v33  ;;  %v1055_v36 = vadd.f32 %v1054_v34, %v2507_v32  ;;  %v1322_v38 = vsel %vm1258_vm7, %v1226_v27, %v1290_v31  ;;  %v1298_v27 = vmul.f32 0.1, %v1234_v26  ;;  %v1199_v34 = vld [vmem:[#allocation2 + $0x70] sm:$0xff] }
 0x1c3   : > { %v1351_v42 = vpack.c.bf16 %v1322_v38, %v1321_v37  ;;  %v1297_v29 = vmul.f32 0.1, %v1233_v25  ;;  %vm1265_vm15 = vcmp.gt.f32.partialorder %v1233_v25, 0.0 }
 0x1c4   : > { %v1124_v44 = vadd.f32 %v1055_v36, %v328_v28  ;;  %v1115_v46 = vadd.f32 %v1114_v30, %v1026_v35  ;;  %v1330_v30 = vsel %vm1266_vm14, %v1234_v26, %v1298_v27  ;;  %v1200_v28 = vld [vmem:[#allocation2 + $0x78] sm:$0xff]  ;;  %v1235_v36 = vadd.f32 %v2686_v13, %v1199_v34  ;;  %v1207_v26 = vld [vmem:[#allocation2 + $0xb0] sm:$0xff] }
 0x1c5   : > { %2122 = vmatmul.msk.bf16.gmra.mxu3 %vm288_vm1, %v1351_v42  ;;  %2138 = vmatmul.msk.bf16.gmra.mxu2 %vm288_vm1, %v1351_v42  ;;  %v1191_v24 = vld [vmem:[#allocation2 + $0x30] sm:$0xff]  ;;  %v1329_v31 = vsel %vm1265_vm15, %v1233_v25, %v1297_v29  ;;  %v1236_v35 = vadd.f32 %v2686_v13, %v1200_v28  ;;  %v1244_v29 = vadd.f32 %v2686_v13, %v1208_v23 }
 0x1c6   : > { %1157 = vst.msk [vmem:[#allocation2 + $0x38] sm:$0xff] %vm288_vm1, %v1124_v44  ;;  %v1148_v49 = vadd.f32 %v1115_v46, %v352_v41  ;;  %v1227_v50 = vadd.f32 %v2686_v13, %v1191_v24  ;;  %v1355_v60 = vpack.c.bf16 %v1330_v30, %v1329_v31  ;;  %v1299_v38 = vmul.f32 0.1, %v1235_v36  ;;  %v1202_v46 = vld [vmem:[#allocation2 + $0x88] sm:$0xff] }
 0x1c7   : > { %v1300_v37 = vmul.f32 0.1, %v1236_v35  ;;  %vm1268_vm0 = vcmp.gt.f32.partialorder %v1236_v35, 0.0  ;;  %vm1267_vm2 = vcmp.gt.f32.partialorder %v1235_v36, 0.0  ;;  %v1238_v24 = vadd.f32 %v2686_v13, %v1202_v46  ;;  %v1210_v46 = vld [vmem:[#allocation2 + $0xc8] sm:$0xff] }
 0x1c8   : > { %1181 = vst.msk [vmem:[#allocation2 + $0xf8] sm:$0xff] %vm288_vm1, %v1148_v49  ;;  %v1291_v39 = vmul.f32 0.1, %v1227_v50  ;;  %vm1259_vm8 = vcmp.gt.f32.partialorder %v1227_v50, 0.0  ;;  %v1331_v42 = vsel %vm1267_vm2, %v1235_v36, %v1299_v38  ;;  %v1201_v49 = vld [vmem:[#allocation2 + $0x80] sm:$0xff] }
 0x1c9   : > { %v1057_v33 = vpop.f32.mrf.mxu0  ;;  %v1332_v41 = vsel %vm1268_vm0, %v1236_v35, %v1300_v37  ;;  %vm1270_vm3 = vcmp.gt.f32.partialorder %v1238_v24, 0.0  ;;  %v1308_v28 = vmul.f32 0.1, %v1244_v29 }
 0x1ca   : > { %v1058_v32 = vadd.f32 %v1057_v33, %v2526_v47  ;;  %v1323_v59 = vsel %vm1259_vm8, %v1227_v50, %v1291_v39  ;;  %v1356_v44 = vpack.c.bf16 %v1332_v41, %v1331_v42  ;;  %v1302_v33 = vmul.f32 0.1, %v1238_v24 }
 0x1cc   : > { %v1125_v63 = vadd.f32 %v1058_v32, %v329_v40  ;;  %v1237_v40 = vadd.f32 %v2686_v13, %v1201_v49  ;;  %v1334_v50 = vsel %vm1270_vm3, %v1238_v24, %v1302_v33  ;;  %v1209_v49 = vld [vmem:[#allocation2 + $0xc0] sm:$0xff]  ;;  %v1246_v33 = vadd.f32 %v2686_v13, %v1210_v46 }
 0x1cd   : > { %v1192_v53 = vld [vmem:[#allocation2 + $0x38] sm:$0xff] }
 0x1ce   : > { %1158 = vst.msk [vmem:[#allocation2 + $0x40] sm:$0xff] %vm288_vm1, %v1125_v63  ;;  %v1228_v54 = vadd.f32 %v2686_v13, %v1192_v53  ;;  %v1301_v32 = vmul.f32 0.1, %v1237_v40  ;;  %vm1269_vm4 = vcmp.gt.f32.partialorder %v1237_v40, 0.0  ;;  %v1373_v53 = vld [vmem:[%s2936_s4] sm:$0x3] }
 0x1cf   : > { %v2758_v39 = vperm.slane %v1373_v53, 0 }
 0x1d0   : > { %vm1260_vm9 = vcmp.gt.f32.partialorder %v1228_v54, 0.0  ;;  %v1292_v43 = vmul.f32 0.1, %v1228_v54  ;;  %v1333_v63 = vsel %vm1269_vm4, %v1237_v40, %v1301_v32 }
 0x1d1   : > { %v1059_v56 = vpop.f32.mrf.mxu0 }
 0x1d2   : > { %v1060_v57 = vadd.f32 %v1059_v56, %v2545_v51  ;;  %v1324_v61 = vsel %vm1260_vm9, %v1228_v54, %v1292_v43  ;;  %v1357_v54 = vpack.c.bf16 %v1334_v50, %v1333_v63  ;;  %v2760_v43 = vperm.slane %v1373_v53, 1  ;;  %v1203_v56 = vld [vmem:[#allocation2 + $0x90] sm:$0xff] }
 0x1d3   : > { %v1352_v52 = vpack.c.bf16 %v1324_v61, %v1323_v59  ;;  %vm1276_vm9 = vcmp.gt.f32.partialorder %v1244_v29, 0.0  ;;  %v1245_v63 = vadd.f32 %v2686_v13, %v1209_v49  ;;  %v1310_v53 = vmul.f32 0.1, %v1246_v33 }
 0x1d4   : > { %v1126_v47 = vadd.f32 %v1060_v57, %v330_v55  ;;  %v1204_v55 = vld [vmem:[#allocation2 + $0x98] sm:$0xff]  ;;  %v1340_v37 = vsel %vm1276_vm9, %v1244_v29, %v1308_v28  ;;  %v1215_v28 = vld [vmem:[#allocation2 + $0xf0] sm:$0xff] }
 0x1d5   : > { %2123 = vmatmul.msk.bf16.gmra.mxu3 %vm288_vm1, %v1352_v52  ;;  %2139 = vmatmul.msk.bf16.gmra.mxu2 %vm288_vm1, %v1352_v52  ;;  %v1193_v62 = vld [vmem:[#allocation2 + $0x40] sm:$0xff]  ;;  %v1240_v61 = vadd.f32 %v2686_v13, %v1204_v55 }
 0x1d6   : > { %1159 = vst.msk [vmem:[#allocation2 + $0x48] sm:$0xff] %vm288_vm1, %v1126_v47  ;;  %v1229_v0 = vadd.f32 %v2686_v13, %v1193_v62  ;;  %v1239_v62 = vadd.f32 %v2686_v13, %v1203_v56 }
 0x1d7   : > { %vm1272_vm5 = vcmp.gt.f32.partialorder %v1240_v61, 0.0 }
 0x1d8   : > { %v1293_v8 = vmul.f32 0.1, %v1229_v0  ;;  %vm1261_vm10 = vcmp.gt.f32.partialorder %v1229_v0, 0.0  ;;  %vm1271_vm6 = vcmp.gt.f32.partialorder %v1239_v62, 0.0 }
 0x1d9   : > { %v1062_v1 = vpop.f32.mrf.mxu0 }
 0x1da   : > { %v1063_v11 = vadd.f32 %v1062_v1, %v2570_v2  ;;  %v1325_v58 = vsel %vm1261_vm10, %v1229_v0, %v1293_v8  ;;  %v1303_v1 = vmul.f32 0.1, %v1239_v62 }
 0x1dc   : > { %v1127_v5 = vadd.f32 %v1063_v11, %v331_v18  ;;  %v1304_v18 = vmul.f32 0.1, %v1240_v61  ;;  %v1335_v8 = vsel %vm1271_vm6, %v1239_v62, %v1303_v1  ;;  %v1212_v62 = vld [vmem:[#allocation2 + $0xd8] sm:$0xff] }
 0x1dd   : > { %v1194_v7 = vld [vmem:[#allocation2 + $0x48] sm:$0xff] }
 0x1de   : > { %1160 = vst.msk [vmem:[#allocation2 + $0x50] sm:$0xff] %vm288_vm1, %v1127_v5  ;;  %v1230_v51 = vadd.f32 %v2686_v13, %v1194_v7  ;;  %v1336_v5 = vsel %vm1272_vm5, %v1240_v61, %v1304_v18  ;;  %v1211_v18 = vld [vmem:[#allocation2 + $0xd0] sm:$0xff] }
 0x1e0   : > { %vm1262_vm11 = vcmp.gt.f32.partialorder %v1230_v51, 0.0  ;;  %v1294_v3 = vmul.f32 0.1, %v1230_v51 }
 0x1e1   : > { %v1064_v10 = vpop.f32.mrf.mxu0 }
 0x1e2   : > { %v1065_v12 = vadd.f32 %v1064_v10, %v2590_v6  ;;  %v1326_v16 = vsel %vm1262_vm11, %v1230_v51, %v1294_v3  ;;  %v1358_v3 = vpack.c.bf16 %v1336_v5, %v1335_v8  ;;  %v1205_v10 = vld [vmem:[#allocation2 + $0xa0] sm:$0xff]  ;;  %vm1278_vm11 = vcmp.gt.f32.partialorder %v1246_v33, 0.0 }
 0x1e3   : > { %v1353_v4 = vpack.c.bf16 %v1326_v16, %v1325_v58 }
 0x1e4   : > { %v1128_v2 = vadd.f32 %v1065_v12, %v332_v45  ;;  %v1206_v45 = vld [vmem:[#allocation2 + $0xa8] sm:$0xff] }
 0x1e5   : > { %2124 = vmatmul.msk.bf16.gmra.mxu3 %vm288_vm1, %v1353_v4  ;;  %2140 = vmatmul.msk.bf16.gmra.mxu2 %vm288_vm1, %v1353_v4  ;;  %v1195_v17 = vld [vmem:[#allocation2 + $0x50] sm:$0xff]  ;;  %v1242_v16 = vadd.f32 %v2686_v13, %v1206_v45 }
 0x1e6   : > { %1161 = vst.msk [vmem:[#allocation2 + $0x58] sm:$0xff] %vm288_vm1, %v1128_v2  ;;  %v1231_v20 = vadd.f32 %v2686_v13, %v1195_v17  ;;  %v1241_v17 = vadd.f32 %v2686_v13, %v1205_v10 }
 0x1e7   : > { %vm1274_vm7 = vcmp.gt.f32.partialorder %v1242_v16, 0.0 }
 0x1e8   : > { %v1295_v19 = vmul.f32 0.1, %v1231_v20  ;;  %vm1263_vm12 = vcmp.gt.f32.partialorder %v1231_v20, 0.0  ;;  %vm1273_vm8 = vcmp.gt.f32.partialorder %v1241_v17, 0.0 }
 0x1ea   : > { %v1327_v15 = vsel %vm1263_vm12, %v1231_v20, %v1295_v19  ;;  %v1306_v20 = vmul.f32 0.1, %v1242_v16  ;;  %vm1277_vm12 = vcmp.gt.f32.partialorder %v1245_v63, 0.0 }
 0x1ed   : > { %v1196_v48 = vld [vmem:[#allocation2 + $0x58] sm:$0xff] }
 0x1ee   : > { %v1232_v14 = vadd.f32 %v2686_v13, %v1196_v48  ;;  %v1305_v48 = vmul.f32 0.1, %v1241_v17 }
 0x1f0   : > { %vm1264_vm13 = vcmp.gt.f32.partialorder %v1232_v14, 0.0  ;;  %v1296_v6 = vmul.f32 0.1, %v1232_v14 }
 0x1f2   : > { %v1328_v21 = vsel %vm1264_vm13, %v1232_v14, %v1296_v6  ;;  %v1338_v6 = vsel %vm1274_vm7, %v1242_v16, %v1306_v20  ;;  %v1213_v20 = vld [vmem:[#allocation2 + $0xe0] sm:$0xff] }
 0x1f3   : > { %v1354_v22 = vpack.c.bf16 %v1328_v21, %v1327_v15 }
 0x1f5   : > { %2125 = vmatmul.msk.bf16.gmra.mxu3 %vm288_vm1, %v1354_v22  ;;  %2141 = vmatmul.msk.bf16.gmra.mxu2 %vm288_vm1, %v1354_v22  ;;  %v1337_v22 = vsel %vm1273_vm8, %v1241_v17, %v1305_v48  ;;  %v1214_v17 = vld [vmem:[#allocation2 + $0xe8] sm:$0xff] }
 0x1f6   : > { %v1359_v9 = vpack.c.bf16 %v1338_v6, %v1337_v22 }
 0x205   : > { %2126 = vmatmul.msk.bf16.gmra.mxu3 %vm288_vm1, %v1355_v60  ;;  %2142 = vmatmul.msk.bf16.gmra.mxu2 %vm288_vm1, %v1355_v60  ;;  %v1243_v60 = vadd.f32 %v2686_v13, %v1207_v26 }
 0x207   : > { %v1307_v34 = vmul.f32 0.1, %v1243_v60  ;;  %vm1275_vm10 = vcmp.gt.f32.partialorder %v1243_v60, 0.0 }
 0x209   : > { %v1339_v42 = vsel %vm1275_vm10, %v1243_v60, %v1307_v34  ;;  %v1216_v60 = vld [vmem:[#allocation2 + $0xf8] sm:$0xff] }
 0x215   : > { %2127 = vmatmul.msk.bf16.gmra.mxu3 %vm288_vm1, %v1356_v44  ;;  %2143 = vmatmul.msk.bf16.gmra.mxu2 %vm288_vm1, %v1356_v44  ;;  %v1360_v44 = vpack.c.bf16 %v1340_v37, %v1339_v42 }
 0x225   : > { %2128 = vmatmul.msk.bf16.gmra.mxu3 %vm288_vm1, %v1357_v54  ;;  %2144 = vmatmul.msk.bf16.gmra.mxu2 %vm288_vm1, %v1357_v54  ;;  %v1309_v54 = vmul.f32 0.1, %v1245_v63 }
 0x228   : > { %v1476_v57 = vpop.f32.mrf.mxu3  ;;  %v1565_v59 = vpop.f32.mrf.mxu2 }
 0x229   : > { %v1477_v52 = vadd.f32 %v1476_v57, %v2758_v39  ;;  %v1566_v47 = vadd.f32 %v1565_v59, %v2760_v43  ;;  %v1342_v57 = vsel %vm1278_vm11, %v1246_v33, %v1310_v53 }
 0x22b   : > { %1645 = vst [vmem:[%s2765_s17] sm:$0xff] %v1477_v52  ;;  %v1341_v52 = vsel %vm1277_vm12, %v1245_v63, %v1309_v54 }
 0x22c   : > { %1646 = vst [vmem:[%s2765_s17 + $0x8] sm:$0xff] %v1566_v47  ;;  %v1361_v47 = vpack.c.bf16 %v1342_v57, %v1341_v52 }
 0x230   : > { %v1478_v11 = vpop.f32.mrf.mxu3  ;;  %v1567_v0 = vpop.f32.mrf.mxu2 }
 0x231   : > { %v1479_v7 = vadd.f32 %v1478_v11, %v2758_v39  ;;  %v1568_v51 = vadd.f32 %v1567_v0, %v2760_v43  ;;  %v1248_v0 = vadd.f32 %v2686_v13, %v1212_v62 }
 0x233   : > { %1647 = vst [vmem:[%s2765_s17 + $0x10] sm:$0xff] %v1479_v7  ;;  %v1312_v8 = vmul.f32 0.1, %v1248_v0  ;;  %vm1280_vm13 = vcmp.gt.f32.partialorder %v1248_v0, 0.0 }
 0x234   : > { %1648 = vst [vmem:[%s2765_s17 + $0x18] sm:$0xff] %v1568_v51  ;;  %v1247_v51 = vadd.f32 %v2686_v13, %v1211_v18 }
 0x235   : > { %2129 = vmatmul.msk.bf16.gmra.mxu3 %vm288_vm1, %v1358_v3  ;;  %2145 = vmatmul.msk.bf16.gmra.mxu2 %vm288_vm1, %v1358_v3 }
 0x236   : > { %v1311_v3 = vmul.f32 0.1, %v1247_v51  ;;  %vm1279_vm14 = vcmp.gt.f32.partialorder %v1247_v51, 0.0 }
 0x238   : > { %v1481_v12 = vpop.f32.mrf.mxu3  ;;  %v1570_v58 = vpop.f32.mrf.mxu2 }
 0x239   : > { %v1482_v4 = vadd.f32 %v1481_v12, %v2758_v39  ;;  %v1571_v2 = vadd.f32 %v1570_v58, %v2760_v43  ;;  %v1344_v12 = vsel %vm1280_vm13, %v1248_v0, %v1312_v8 }
 0x23b   : > { %1649 = vst [vmem:[%s2765_s17 + $0x20] sm:$0xff] %v1482_v4  ;;  %v1343_v4 = vsel %vm1279_vm14, %v1247_v51, %v1311_v3 }
 0x23c   : > { %1650 = vst [vmem:[%s2765_s17 + $0x28] sm:$0xff] %v1571_v2  ;;  %v1362_v2 = vpack.c.bf16 %v1344_v12, %v1343_v4 }
 0x240   : > { %v1483_v14 = vpop.f32.mrf.mxu3  ;;  %v1572_v19 = vpop.f32.mrf.mxu2 }
 0x241   : > { %v1484_v15 = vadd.f32 %v1483_v14, %v2758_v39  ;;  %v1573_v21 = vadd.f32 %v1572_v19, %v2760_v43  ;;  %v1250_v19 = vadd.f32 %v2686_v13, %v1214_v17 }
 0x243   : > { %1651 = vst [vmem:[%s2765_s17 + $0x30] sm:$0xff] %v1484_v15  ;;  %v1314_v22 = vmul.f32 0.1, %v1250_v19  ;;  %vm1282_vm15 = vcmp.gt.f32.partialorder %v1250_v19, 0.0 }
 0x244   : > { %1652 = vst [vmem:[%s2765_s17 + $0x38] sm:$0xff] %v1573_v21  ;;  %v1249_v21 = vadd.f32 %v2686_v13, %v1213_v20 }
 0x245   : > { %2130 = vmatmul.msk.bf16.gmra.mxu3 %vm288_vm1, %v1359_v9  ;;  %2146 = vmatmul.msk.bf16.gmra.mxu2 %vm288_vm1, %v1359_v9 }
 0x246   : > { %v1313_v9 = vmul.f32 0.1, %v1249_v21  ;;  %vm1281_vm0 = vcmp.gt.f32.partialorder %v1249_v21, 0.0 }
 0x248   : > { %v1486_v25 = vpop.f32.mrf.mxu3  ;;  %v1575_v27 = vpop.f32.mrf.mxu2 }
 0x249   : > { %v1487_v30 = vadd.f32 %v1486_v25, %v2758_v39  ;;  %v1576_v31 = vadd.f32 %v1575_v27, %v2760_v43  ;;  %v1346_v25 = vsel %vm1282_vm15, %v1250_v19, %v1314_v22 }
 0x24b   : > { %1653 = vst [vmem:[%s2765_s17 + $0x40] sm:$0xff] %v1487_v30  ;;  %v1345_v30 = vsel %vm1281_vm0, %v1249_v21, %v1313_v9 }
 0x24c   : > { %1654 = vst [vmem:[%s2765_s17 + $0x48] sm:$0xff] %v1576_v31  ;;  %v1363_v31 = vpack.c.bf16 %v1346_v25, %v1345_v30 }
 0x250   : > { %v1488_v35 = vpop.f32.mrf.mxu3  ;;  %v1577_v36 = vpop.f32.mrf.mxu2 }
 0x251   : > { %v1489_v38 = vadd.f32 %v1488_v35, %v2758_v39  ;;  %v1578_v41 = vadd.f32 %v1577_v36, %v2760_v43  ;;  %v1252_v36 = vadd.f32 %v2686_v13, %v1216_v60 }
 0x253   : > { %1655 = vst [vmem:[%s2765_s17 + $0x50] sm:$0xff] %v1489_v38  ;;  %v1316_v42 = vmul.f32 0.1, %v1252_v36  ;;  %vm1284_vm2 = vcmp.gt.f32.partialorder %v1252_v36, 0.0 }
 0x254   : > { %1656 = vst [vmem:[%s2765_s17 + $0x58] sm:$0xff] %v1578_v41  ;;  %v1251_v41 = vadd.f32 %v2686_v13, %v1215_v28 }
 0x255   : > { %2131 = vmatmul.msk.bf16.gmra.mxu3 %vm288_vm1, %v1360_v44  ;;  %2147 = vmatmul.msk.bf16.gmra.mxu2 %vm288_vm1, %v1360_v44 }
 0x256   : > { %v1315_v44 = vmul.f32 0.1, %v1251_v41  ;;  %vm1283_vm3 = vcmp.gt.f32.partialorder %v1251_v41, 0.0 }
 0x258   : > { %v1491_v24 = vpop.f32.mrf.mxu3  ;;  %v1580_v40 = vpop.f32.mrf.mxu2 }
 0x259   : > { %v1492_v32 = vadd.f32 %v1491_v24, %v2758_v39  ;;  %v1581_v50 = vadd.f32 %v1580_v40, %v2760_v43  ;;  %v1348_v24 = vsel %vm1284_vm2, %v1252_v36, %v1316_v42 }
 0x25b   : > { %1657 = vst [vmem:[%s2765_s17 + $0x60] sm:$0xff] %v1492_v32  ;;  %v1347_v32 = vsel %vm1283_vm3, %v1251_v41, %v1315_v44 }
 0x25c   : > { %1658 = vst [vmem:[%s2765_s17 + $0x68] sm:$0xff] %v1581_v50  ;;  %v1364_v13 = vpack.c.bf16 %v1348_v24, %v1347_v32 }
 0x260   : > { %v1493_v55 = vpop.f32.mrf.mxu3  ;;  %v1582_v56 = vpop.f32.mrf.mxu2 }
 0x261   : > { %v1494_v59 = vadd.f32 %v1493_v55, %v2758_v39  ;;  %v1583_v61 = vadd.f32 %v1582_v56, %v2760_v43 }
 0x263   : > { %1659 = vst [vmem:[%s2765_s17 + $0x70] sm:$0xff] %v1494_v59 }
 0x264   : > { %1660 = vst [vmem:[%s2765_s17 + $0x78] sm:$0xff] %v1583_v61 }
 0x265   : > { %2132 = vmatmul.msk.bf16.gmra.mxu3 %vm288_vm1, %v1361_v47  ;;  %2148 = vmatmul.msk.bf16.gmra.mxu2 %vm288_vm1, %v1361_v47 }
 0x268   : > { %v1496_v1 = vpop.f32.mrf.mxu3  ;;  %v1585_v11 = vpop.f32.mrf.mxu2 }
 0x269   : > { %v1497_v5 = vadd.f32 %v1496_v1, %v2758_v39  ;;  %v1586_v7 = vadd.f32 %v1585_v11, %v2760_v43 }
 0x26b   : > { %1661 = vst [vmem:[%s2765_s17 + $0x80] sm:$0xff] %v1497_v5 }
 0x26c   : > { %1662 = vst [vmem:[%s2765_s17 + $0x88] sm:$0xff] %v1586_v7 }
 0x270   : > { %v1498_v45 = vpop.f32.mrf.mxu3  ;;  %v1587_v10 = vpop.f32.mrf.mxu2 }
 0x271   : > { %v1499_v58 = vadd.f32 %v1498_v45, %v2758_v39  ;;  %v1588_v16 = vadd.f32 %v1587_v10, %v2760_v43 }
 0x273   : > { %1663 = vst [vmem:[%s2765_s17 + $0x90] sm:$0xff] %v1499_v58 }
 0x274   : > { %1664 = vst [vmem:[%s2765_s17 + $0x98] sm:$0xff] %v1588_v16 }
 0x275   : > { %2133 = vmatmul.msk.bf16.gmra.mxu3 %vm288_vm1, %v1362_v2  ;;  %2149 = vmatmul.msk.bf16.gmra.mxu2 %vm288_vm1, %v1362_v2 }
 0x278   : > { %v1501_v48 = vpop.f32.mrf.mxu3  ;;  %v1590_v14 = vpop.f32.mrf.mxu2 }
 0x279   : > { %v1502_v6 = vadd.f32 %v1501_v48, %v2758_v39  ;;  %v1591_v15 = vadd.f32 %v1590_v14, %v2760_v43 }
 0x27b   : > { %1665 = vst [vmem:[%s2765_s17 + $0xa0] sm:$0xff] %v1502_v6 }
 0x27c   : > { %1666 = vst [vmem:[%s2765_s17 + $0xa8] sm:$0xff] %v1591_v15 }
 0x280   : > { %v1503_v23 = vpop.f32.mrf.mxu3  ;;  %v1592_v26 = vpop.f32.mrf.mxu2 }
 0x281   : > { %v1504_v27 = vadd.f32 %v1503_v23, %v2758_v39  ;;  %v1593_v29 = vadd.f32 %v1592_v26, %v2760_v43 }
 0x283   : > { %1667 = vst [vmem:[%s2765_s17 + $0xb0] sm:$0xff] %v1504_v27 }
 0x284   : > { %1668 = vst [vmem:[%s2765_s17 + $0xb8] sm:$0xff] %v1593_v29 }
 0x285   : > { %2134 = vmatmul.msk.bf16.gmra.mxu3 %vm288_vm1, %v1363_v31  ;;  %2150 = vmatmul.msk.bf16.gmra.mxu2 %vm288_vm1, %v1363_v31 }
 0x288   : > { %v1506_v34 = vpop.f32.mrf.mxu3  ;;  %v1595_v35 = vpop.f32.mrf.mxu2 }
 0x289   : > { %v1507_v37 = vadd.f32 %v1506_v34, %v2758_v39  ;;  %v1596_v38 = vadd.f32 %v1595_v35, %v2760_v43 }
 0x28b   : > { %1669 = vst [vmem:[%s2765_s17 + $0xc0] sm:$0xff] %v1507_v37 }
 0x28c   : > { %1670 = vst [vmem:[%s2765_s17 + $0xc8] sm:$0xff] %v1596_v38 }
 0x290   : > { %v1508_v46 = vpop.f32.mrf.mxu3  ;;  %v1597_v49 = vpop.f32.mrf.mxu2 }
 0x291   : > { %v1509_v40 = vadd.f32 %v1508_v46, %v2758_v39  ;;  %v1598_v33 = vadd.f32 %v1597_v49, %v2760_v43 }
 0x293   : > { %1671 = vst [vmem:[%s2765_s17 + $0xd0] sm:$0xff] %v1509_v40 }
 0x294   : > { %1672 = vst [vmem:[%s2765_s17 + $0xd8] sm:$0xff] %v1598_v33 }
 0x295   : > { %2135 = vmatmul.msk.bf16.gmra.mxu3 %vm288_vm1, %v1364_v13  ;;  %2151 = vmatmul.msk.bf16.gmra.mxu2 %vm288_vm1, %v1364_v13 }
 0x298   : > { %v1511_v50 = vpop.f32.mrf.mxu3  ;;  %v1600_v63 = vpop.f32.mrf.mxu2 }
 0x299   : > { %v1512_v53 = vadd.f32 %v1511_v50, %v2758_v39  ;;  %v1601_v54 = vadd.f32 %v1600_v63, %v2760_v43 }
 0x29b   : > { %1673 = vst [vmem:[%s2765_s17 + $0xe0] sm:$0xff] %v1512_v53 }
 0x29c   : > { %1674 = vst [vmem:[%s2765_s17 + $0xe8] sm:$0xff] %v1601_v54 }
 0x2a0   : > { %v1513_v55 = vpop.f32.mrf.mxu3  ;;  %v1602_v56 = vpop.f32.mrf.mxu2 }
 0x2a1   : > { %v1514_v57 = vadd.f32 %v1513_v55, %v2758_v39  ;;  %v1603_v59 = vadd.f32 %v1602_v56, %v2760_v43 }
 0x2a3   : > { %1675 = vst [vmem:[%s2765_s17 + $0xf0] sm:$0xff] %v1514_v57 }
 0x2a4   : > { %1676 = vst [vmem:[%s2765_s17 + $0xf8] sm:$0xff] %v1603_v59 }
 0x2a8   : > { %v1516_v61 = vpop.f32.mrf.mxu3  ;;  %v1605_v52 = vpop.f32.mrf.mxu2 }
 0x2a9   : > { %v1517_v47 = vadd.f32 %v1516_v61, %v2758_v39  ;;  %v1606_v62 = vadd.f32 %v1605_v52, %v2760_v43 }
 0x2ab   : > { %1677 = vst [vmem:[%s2765_s17 + $0x100] sm:$0xff] %v1517_v47 }
 0x2ac   : > { %1678 = vst [vmem:[%s2765_s17 + $0x108] sm:$0xff] %v1606_v62 }
 0x2b0   : > { %v1518_v18 = vpop.f32.mrf.mxu3  ;;  %v1607_v1 = vpop.f32.mrf.mxu2 }
 0x2b1   : > { %v1519_v11 = vadd.f32 %v1518_v18, %v2758_v39  ;;  %v1608_v0 = vadd.f32 %v1607_v1, %v2760_v43 }
 0x2b3   : > { %1679 = vst [vmem:[%s2765_s17 + $0x110] sm:$0xff] %v1519_v11 }
 0x2b4   : > { %1680 = vst [vmem:[%s2765_s17 + $0x118] sm:$0xff] %v1608_v0 }
 0x2b8   : > { %v1521_v5 = vpop.f32.mrf.mxu3  ;;  %v1610_v7 = vpop.f32.mrf.mxu2 }
 0x2b9   : > { %v1522_v51 = vadd.f32 %v1521_v5, %v2758_v39  ;;  %v1611_v8 = vadd.f32 %v1610_v7, %v2760_v43 }
 0x2bb   : > { %1681 = vst [vmem:[%s2765_s17 + $0x120] sm:$0xff] %v1522_v51 }
 0x2bc   : > { %1682 = vst [vmem:[%s2765_s17 + $0x128] sm:$0xff] %v1611_v8 }
 0x2c0   : > { %v1523_v3 = vpop.f32.mrf.mxu3  ;;  %v1612_v45 = vpop.f32.mrf.mxu2 }
 0x2c1   : > { %v1524_v10 = vadd.f32 %v1523_v3, %v2758_v39  ;;  %v1613_v12 = vadd.f32 %v1612_v45, %v2760_v43 }
 0x2c3   : > { %1683 = vst [vmem:[%s2765_s17 + $0x130] sm:$0xff] %v1524_v10 }
 0x2c4   : > { %1684 = vst [vmem:[%s2765_s17 + $0x138] sm:$0xff] %v1613_v12 }
 0x2c8   : > { %v1526_v58 = vpop.f32.mrf.mxu3  ;;  %v1615_v16 = vpop.f32.mrf.mxu2 }
 0x2c9   : > { %v1527_v4 = vadd.f32 %v1526_v58, %v2758_v39  ;;  %v1616_v2 = vadd.f32 %v1615_v16, %v2760_v43 }
 0x2cb   : > { %1685 = vst [vmem:[%s2765_s17 + $0x140] sm:$0xff] %v1527_v4 }
 0x2cc   : > { %1686 = vst [vmem:[%s2765_s17 + $0x148] sm:$0xff] %v1616_v2 }
 0x2d0   : > { %v1528_v17 = vpop.f32.mrf.mxu3  ;;  %v1617_v20 = vpop.f32.mrf.mxu2 }
 0x2d1   : > { %v1529_v48 = vadd.f32 %v1528_v17, %v2758_v39  ;;  %v1618_v14 = vadd.f32 %v1617_v20, %v2760_v43 }
 0x2d3   : > { %1687 = vst [vmem:[%s2765_s17 + $0x150] sm:$0xff] %v1529_v48 }
 0x2d4   : > { %1688 = vst [vmem:[%s2765_s17 + $0x158] sm:$0xff] %v1618_v14 }
 0x2d8   : > { %v1531_v19 = vpop.f32.mrf.mxu3  ;;  %v1620_v6 = vpop.f32.mrf.mxu2 }
 0x2d9   : > { %v1532_v15 = vadd.f32 %v1531_v19, %v2758_v39  ;;  %v1621_v21 = vadd.f32 %v1620_v6, %v2760_v43 }
 0x2db   : > { %1689 = vst [vmem:[%s2765_s17 + $0x160] sm:$0xff] %v1532_v15 }
 0x2dc   : > { %1690 = vst [vmem:[%s2765_s17 + $0x168] sm:$0xff] %v1621_v21 }
 0x2e0   : > { %v1533_v22 = vpop.f32.mrf.mxu3  ;;  %v1622_v9 = vpop.f32.mrf.mxu2 }
 0x2e1   : > { %v1534_v23 = vadd.f32 %v1533_v22, %v2758_v39  ;;  %v1623_v26 = vadd.f32 %v1622_v9, %v2760_v43 }
 0x2e3   : > { %1691 = vst [vmem:[%s2765_s17 + $0x170] sm:$0xff] %v1534_v23 }
 0x2e4   : > { %1692 = vst [vmem:[%s2765_s17 + $0x178] sm:$0xff] %v1623_v26 }
 0x2e8   : > { %v1536_v25 = vpop.f32.mrf.mxu3  ;;  %v1625_v27 = vpop.f32.mrf.mxu2 }
 0x2e9   : > { %v1537_v29 = vadd.f32 %v1536_v25, %v2758_v39  ;;  %v1626_v30 = vadd.f32 %v1625_v27, %v2760_v43 }
 0x2eb   : > { %1693 = vst [vmem:[%s2765_s17 + $0x180] sm:$0xff] %v1537_v29 }
 0x2ec   : > { %1694 = vst [vmem:[%s2765_s17 + $0x188] sm:$0xff] %v1626_v30 }
 0x2f0   : > { %v1538_v31 = vpop.f32.mrf.mxu3  ;;  %v1627_v60 = vpop.f32.mrf.mxu2 }
 0x2f1   : > { %v1539_v28 = vadd.f32 %v1538_v31, %v2758_v39  ;;  %v1628_v34 = vadd.f32 %v1627_v60, %v2760_v43 }
 0x2f3   : > { %1695 = vst [vmem:[%s2765_s17 + $0x190] sm:$0xff] %v1539_v28 }
 0x2f4   : > { %1696 = vst [vmem:[%s2765_s17 + $0x198] sm:$0xff] %v1628_v34 }
 0x2f8   : > { %v1541_v35 = vpop.f32.mrf.mxu3  ;;  %v1630_v36 = vpop.f32.mrf.mxu2 }
 0x2f9   : > { %v1542_v37 = vadd.f32 %v1541_v35, %v2758_v39  ;;  %v1631_v38 = vadd.f32 %v1630_v36, %v2760_v43 }
 0x2fb   : > { %1697 = vst [vmem:[%s2765_s17 + $0x1a0] sm:$0xff] %v1542_v37 }
 0x2fc   : > { %1698 = vst [vmem:[%s2765_s17 + $0x1a8] sm:$0xff] %v1631_v38 }
 0x300   : > { %v1543_v41 = vpop.f32.mrf.mxu3  ;;  %v1632_v42 = vpop.f32.mrf.mxu2 }
 0x301   : > { %v1544_v44 = vadd.f32 %v1543_v41, %v2758_v39  ;;  %v1633_v46 = vadd.f32 %v1632_v42, %v2760_v43 }
 0x303   : > { %1699 = vst [vmem:[%s2765_s17 + $0x1b0] sm:$0xff] %v1544_v44 }
 0x304   : > { %1700 = vst [vmem:[%s2765_s17 + $0x1b8] sm:$0xff] %v1633_v46 }
 0x308   : > { %v1546_v49 = vpop.f32.mrf.mxu3  ;;  %v1635_v24 = vpop.f32.mrf.mxu2 }
 0x309   : > { %v1547_v40 = vadd.f32 %v1546_v49, %v2758_v39  ;;  %v1636_v33 = vadd.f32 %v1635_v24, %v2760_v43 }
 0x30b   : > { %1701 = vst [vmem:[%s2765_s17 + $0x1c0] sm:$0xff] %v1547_v40 }
 0x30c   : > { %1702 = vst [vmem:[%s2765_s17 + $0x1c8] sm:$0xff] %v1636_v33 }
 0x310   : > { %v1548_v32 = vpop.f32.mrf.mxu3  ;;  %v1637_v13 = vpop.f32.mrf.mxu2 }
 0x311   : > { %v1549_v50 = vadd.f32 %v1548_v32, %v2758_v39  ;;  %v1638_v63 = vadd.f32 %v1637_v13, %v2760_v43 }
 0x313   : > { %1703 = vst [vmem:[%s2765_s17 + $0x1d0] sm:$0xff] %v1549_v50 }
 0x314   : > { %1704 = vst [vmem:[%s2765_s17 + $0x1d8] sm:$0xff] %v1638_v63 }
 0x318   : > { %v1551_v53 = vpop.f32.mrf.mxu3  ;;  %v1640_v54 = vpop.f32.mrf.mxu2 }
 0x319   : > { %v1552_v55 = vadd.f32 %v1551_v53, %v2758_v39  ;;  %v1641_v56 = vadd.f32 %v1640_v54, %v2760_v43 }
 0x31b   : > { %1705 = vst [vmem:[%s2765_s17 + $0x1e0] sm:$0xff] %v1552_v55 }
 0x31c   : > { %1706 = vst [vmem:[%s2765_s17 + $0x1e8] sm:$0xff] %v1641_v56 }
 0x320   : > { %v1553_v57 = vpop.f32.mrf.mxu3  ;;  %v1642_v59 = vpop.f32.mrf.mxu2 }
 0x321   : > { %v1554_v61 = vadd.f32 %v1553_v57, %v2758_v39  ;;  %v1643_v52 = vadd.f32 %v1642_v59, %v2760_v43 }
 0x323   : > { %1707 = vst [vmem:[%s2765_s17 + $0x1f0] sm:$0xff] %v1554_v61 }
 0x324   : > { %1708 = vst [vmem:[%s2765_s17 + $0x1f8] sm:$0xff] %v1643_v52 }
 0x325 PF: > { %s15_s20 = sadd.s32 1, %s2290_s20   ;;  %s2938_s18 = smov %s2286_s19 }
 0x326   : > { %p12_p5 = scmp.ge.s32.totalorder %s15_s20, 4   ;;  %s2939_s19 = smov %s2941_s21 }
 0x328   :  { %14 = sbr.rel (!%p12_p5) target bundleno = 2 (0x2), region = 81 }

</bundles_post_ra>
